<compile_context>
chip_gen: v6e
topology: v6e:2x2x1
jax: 0.10.0
libtpu: 0.0.40
codegen_flags: <defaults>
</compile_context>

<pallas_src>
import functools

import jax
import jax.numpy as jnp
from jax.experimental import pallas as pl
from jax.experimental.pallas import tpu as pltpu

EPS = 1e-5
VMEM_LIMIT_BYTES = 32 * 1024 * 1024  # safe scoped-VMEM cap on v5e / v6e / v7x


def _pick_tile(dim, target, quantum):
    """Largest multiple of `quantum` that divides `dim` and is <= target.

    Falls back to the full dimension (always a legal block shape)."""
    if dim <= target:
        return dim
    t = (target // quantum) * quantum
    while t >= quantum:
        if dim % t == 0:
            return t
        t -= quantum
    return dim


# ----------------------------------------------------------------------------
# Tiled MXU matmul (used for both the 3x3 conv via im2col and the 1x1 conv)
# ----------------------------------------------------------------------------
def _matmul_kernel(a_ref, b_ref, o_ref, acc_ref):
    @pl.when(pl.program_id(2) == 0)
    def _init():
        acc_ref[...] = jnp.zeros_like(acc_ref)

    acc_ref[...] += jnp.dot(a_ref[...], b_ref[...],
                            preferred_element_type=jnp.float32)

    @pl.when(pl.program_id(2) == pl.num_programs(2) - 1)
    def _store():
        o_ref[...] = acc_ref[...].astype(o_ref.dtype)


def pallas_matmul(a, b, out_dtype=None, tm=256, tn=256, tk=512):
    M, K = a.shape
    _, N = b.shape
    out_dtype = a.dtype if out_dtype is None else out_dtype
    tm = _pick_tile(M, tm, 8)
    tn = _pick_tile(N, tn, 128)
    tk = _pick_tile(K, tk, 128)
    grid = (M // tm, N // tn, K // tk)
    return pl.pallas_call(
        _matmul_kernel,
        out_shape=jax.ShapeDtypeStruct((M, N), out_dtype),
        grid=grid,
        in_specs=[
            pl.BlockSpec((tm, tk), lambda i, j, k: (i, k)),
            pl.BlockSpec((tk, tn), lambda i, j, k: (k, j)),
        ],
        out_specs=pl.BlockSpec((tm, tn), lambda i, j, k: (i, j)),
        scratch_shapes=[pltpu.VMEM((tm, tn), jnp.float32)],
        compiler_params=pltpu.CompilerParams(
            dimension_semantics=("parallel", "parallel", "arbitrary"),
            vmem_limit_bytes=VMEM_LIMIT_BYTES,
        ),
    )(a, b)


# ----------------------------------------------------------------------------
# BatchNorm pass 1: per-channel sum and sum(x*x), accumulated across M tiles
# ----------------------------------------------------------------------------
def _bn_stats_kernel(x_ref, sum_ref, sq_ref):
    @pl.when(pl.program_id(1) == 0)
    def _init():
        sum_ref[...] = jnp.zeros_like(sum_ref)
        sq_ref[...] = jnp.zeros_like(sq_ref)

    x = x_ref[...].astype(jnp.float32)          # accumulate in f32 always
    sum_ref[...] += jnp.sum(x, axis=0, keepdims=True)
    sq_ref[...] += jnp.sum(x * x, axis=0, keepdims=True)


def pallas_bn_stats(x2d, m_tile=256, c_tile=512):
    M, C = x2d.shape
    tm = _pick_tile(M, m_tile, 8)
    tc = _pick_tile(C, c_tile, 128)
    grid = (C // tc, M // tm)                   # reduction (M) axis last
    sums, sqs = pl.pallas_call(
        _bn_stats_kernel,
        out_shape=(
            jax.ShapeDtypeStruct((1, C), jnp.float32),
            jax.ShapeDtypeStruct((1, C), jnp.float32),
        ),
        grid=grid,
        in_specs=[pl.BlockSpec((tm, tc), lambda c, m: (m, c))],
        out_specs=(
            pl.BlockSpec((1, tc), lambda c, m: (0, c)),
            pl.BlockSpec((1, tc), lambda c, m: (0, c)),
        ),
        compiler_params=pltpu.CompilerParams(
            dimension_semantics=("parallel", "arbitrary"),
            vmem_limit_bytes=VMEM_LIMIT_BYTES,
        ),
    )(x2d)
    return sums[0], sqs[0]


# ----------------------------------------------------------------------------
# BatchNorm pass 2: y = x * scale + shift (+ optional ReLU)
# ----------------------------------------------------------------------------
def _bn_apply_kernel(x_ref, scale_ref, shift_ref, o_ref, *, relu):
    x = x_ref[...].astype(jnp.float32)
    y = x * scale_ref[...] + shift_ref[...]     # 1 mul + 1 add per element
    if relu:
        y = jnp.maximum(y, 0.0)
    o_ref[...] = y.astype(o_ref.dtype)


def pallas_bn_apply(x2d, scale, shift, relu, m_tile=256, c_tile=512):
    M, C = x2d.shape
    tm = _pick_tile(M, m_tile, 8)
    tc = _pick_tile(C, c_tile, 128)
    grid = (M // tm, C // tc)
    kernel = functools.partial(_bn_apply_kernel, relu=relu)
    return pl.pallas_call(
        kernel,
        out_shape=jax.ShapeDtypeStruct((M, C), x2d.dtype),
        grid=grid,
        in_specs=[
            pl.BlockSpec((tm, tc), lambda m, c: (m, c)),
            pl.BlockSpec((1, tc), lambda m, c: (0, c)),
            pl.BlockSpec((1, tc), lambda m, c: (0, c)),
        ],
        out_specs=pl.BlockSpec((tm, tc), lambda m, c: (m, c)),
        compiler_params=pltpu.CompilerParams(
            dimension_semantics=("parallel", "parallel"),
            vmem_limit_bytes=VMEM_LIMIT_BYTES,
        ),
    )(x2d, scale.reshape(1, C).astype(jnp.float32),
      shift.reshape(1, C).astype(jnp.float32))


def batchnorm2d_train(x2d, gamma, beta, *, relu, eps=EPS):
    """Training-mode BatchNorm2d over a (M=N*H*W, C) slab, batch statistics."""
    M, _ = x2d.shape
    s, sq = pallas_bn_stats(x2d)
    mean = s * (1.0 / M)
    var = jnp.maximum(sq * (1.0 / M) - mean * mean, 0.0)   # biased variance
    inv = jax.lax.rsqrt(var + eps)
    scale = gamma.astype(jnp.float32) * inv                 # folded per channel
    shift = beta.astype(jnp.float32) - mean * scale
    # TODO(synk): nn.BatchNorm2d also updates running_mean/running_var
    # (momentum=0.01, unbiased var) as a training-time buffer side effect;
    # that state update is not modeled here (forward output is unaffected).
    return pallas_bn_apply(x2d, scale, shift, relu)


# ----------------------------------------------------------------------------
# LSN_later forward
# ----------------------------------------------------------------------------
def _im2col_3x3(x_nhwc, stride, pad):
    """3x3 patches -> (N*Ho*Wo, Cin*9); K index = ci*9 + ky*3 + kx."""
    n, h, w, c = x_nhwc.shape
    ho = (h + 2 * pad - 3) // stride + 1
    wo = (w + 2 * pad - 3) // stride + 1
    xp = jnp.pad(x_nhwc, ((0, 0), (pad, pad), (pad, pad), (0, 0)))
    cols = []
    for ky in range(3):
        for kx in range(3):
            cols.append(xp[:, ky:ky + (ho - 1) * stride + 1:stride,
                           kx:kx + (wo - 1) * stride + 1:stride, :])
    patches = jnp.stack(cols, axis=-1)                    # (N, Ho, Wo, Cin, 9)
    return patches.reshape(n * ho * wo, c * 9), ho, wo


def lsn_later_forward(x_nchw, params, stride=1):
    """out1 = ReLU(BN(conv3x3(x))),  out2 = BN(conv1x1(out1))."""
    n, cin, h, w = x_nchw.shape
    wa = params["wa"]                 # (inter, cin, 3, 3)
    wb = params["wb"]                 # (out,   inter, 1, 1)
    ci = wa.shape[0]
    co = wb.shape[0]

    # ---- part_a: conv3x3 (pad=1, bias=False) -> BN -> ReLU ------------------
    # TODO(synk): im2col patch extraction is layout plumbing in the wrapper; a
    # fused direct-conv kernel would avoid materializing the 9x patches.
    x_nhwc = jnp.transpose(x_nchw, (0, 2, 3, 1))
    patches, ho, wo = _im2col_3x3(x_nhwc, stride, pad=1)
    wa_flat = jnp.transpose(wa.reshape(ci, cin * 9)).astype(x_nchw.dtype)
    conv_a = pallas_matmul(patches, wa_flat, out_dtype=x_nchw.dtype)   # (M, ci)
    out1_2d = batchnorm2d_train(conv_a, params["ga"], params["ba"], relu=True)

    # ---- part_b: conv1x1 (bias=False) -> BN (no ReLU) -----------------------
    wb_flat = jnp.transpose(wb.reshape(co, ci)).astype(x_nchw.dtype)
    conv_b = pallas_matmul(out1_2d, wb_flat, out_dtype=x_nchw.dtype)   # (M, co)
    out2_2d = batchnorm2d_train(conv_b, params["gb"], params["bb"], relu=False)

    # Back to the PyTorch NCHW boundary layout.
    out1 = out1_2d.reshape(n, ho, wo, ci).transpose(0, 3, 1, 2)
    out2 = out2_2d.reshape(n, ho, wo, co).transpose(0, 3, 1, 2)
    return out1, out2


# ----------------------------------------------------------------------------
# Pure-JAX reference (mirrors the PyTorch module in training mode)
# ----------------------------------------------------------------------------
def _conv_ref(x, w, stride, pad):
    return jax.lax.conv_general_dilated(
        x, w, window_strides=(stride, stride),
        padding=[(pad, pad), (pad, pad)],
        dimension_numbers=("NCHW", "OIHW", "NCHW"))


def _bn_ref(x, gamma, beta):
    mean = jnp.mean(x, axis=(0, 2, 3), keepdims=True)
    var = jnp.mean((x - mean) ** 2, axis=(0, 2, 3), keepdims=True)
    return (gamma.reshape(1, -1, 1, 1) * (x - mean) / jnp.sqrt(var + EPS)
            + beta.reshape(1, -1, 1, 1))


def lsn_later_reference(x, params, stride=1):
    a = _conv_ref(x, params["wa"], stride, 1)
    out1 = jnp.maximum(_bn_ref(a, params["ga"], params["ba"]), 0.0)
    b = _conv_ref(out1, params["wb"], 1, 0)
    out2 = _bn_ref(b, params["gb"], params["bb"])
    return out1, out2


if __name__ == "__main__":
    key = jax.random.PRNGKey(0)
    ks = jax.random.split(key, 7)

    N, IN_PLANES, H, W = 2, 4, 16, 16
    OUT_PLANES = 32
    INTER = OUT_PLANES // 4            # 8
    STRIDE = 1

    x = jax.random.normal(ks[0], (N, IN_PLANES, H, W), jnp.float32)
    params = {
        "wa": 0.1 * jax.random.normal(ks[1], (INTER, IN_PLANES, 3, 3), jnp.float32),
        "ga": 1.0 + 0.1 * jax.random.normal(ks[2], (INTER,), jnp.float32),
        "ba": 0.1 * jax.random.normal(ks[3], (INTER,), jnp.float32),
        "wb": 0.1 * jax.random.normal(ks[4], (OUT_PLANES, INTER, 1, 1), jnp.float32),
        "gb": 1.0 + 0.1 * jax.random.normal(ks[5], (OUT_PLANES,), jnp.float32),
        "bb": 0.1 * jax.random.normal(ks[6], (OUT_PLANES,), jnp.float32),
    }

    forward = jax.jit(functools.partial(lsn_later_forward, stride=STRIDE))
    out1, out2 = jax.block_until_ready(forward(x, params))

    ref1, ref2 = lsn_later_reference(x, params, stride=STRIDE)
    assert out1.shape == (N, INTER, H, W)
    assert out2.shape == (N, OUT_PLANES, H, W)
    assert float(jnp.max(jnp.abs(out1 - ref1))) < 1e-3
    assert float(jnp.max(jnp.abs(out2 - ref2))) < 1e-3

    print("KERNEL_OK")
</pallas_src>

<mosaic_0001>
module attributes {stable_mosaic.version = 11 : i64} {
  func.func @_bn_stats_kernel(%arg0: i32, %arg1: i32, %arg2: memref<256x8xf32, #tpu.memory_space<vmem>>, %arg3: memref<1x8xf32, #tpu.memory_space<vmem>>, %arg4: memref<1x8xf32, #tpu.memory_space<vmem>>) attributes {dimension_semantics = [#tpu.dimension_semantics<parallel>, #tpu.dimension_semantics<arbitrary>], iteration_bounds = array<i64: 1, 2>, scalar_prefetch = 0 : i64, scratch_operands = 0 : i64, tpu.core_type = #tpu.core_type<tc>, window_params = [{transform_indices = @transform_0, window_bounds = array<i64: 256, 8>}, {transform_indices = @transform_1, window_bounds = array<i64: 1, 8>}, {transform_indices = @transform_2, window_bounds = array<i64: 1, 8>}]} {
    %c0_i32 = arith.constant 0 : i32
    %0 = arith.cmpi eq, %arg1, %c0_i32 : i32
    %1 = arith.extui %0 : i1 to i32
    %c0_i32_0 = arith.constant 0 : i32
    %2 = arith.cmpi ne, %1, %c0_i32_0 : i32
    scf.if %2 {
      %cst_11 = arith.constant 0.000000e+00 : f32
      %15 = vector.broadcast %cst_11 : f32 to vector<1x8xf32>
      %c0_12 = arith.constant 0 : index
      %c0_13 = arith.constant 0 : index
      %16 = vector.load %arg3[%c0_12, %c0_13] : memref<1x8xf32, #tpu.memory_space<vmem>>, vector<1x8xf32>
      tpu.vector_store %arg3[%c0_12, %c0_13], %15 {strides = array<i32>} : memref<1x8xf32, #tpu.memory_space<vmem>>, vector<1x8xf32>,
      %cst_14 = arith.constant 0.000000e+00 : f32
      %17 = vector.broadcast %cst_14 : f32 to vector<1x8xf32>
      %c0_15 = arith.constant 0 : index
      %c0_16 = arith.constant 0 : index
      %18 = vector.load %arg4[%c0_15, %c0_16] : memref<1x8xf32, #tpu.memory_space<vmem>>, vector<1x8xf32>
      tpu.vector_store %arg4[%c0_15, %c0_16], %17 {strides = array<i32>} : memref<1x8xf32, #tpu.memory_space<vmem>>, vector<1x8xf32>,
    } else {
    }
    %c0 = arith.constant 0 : index
    %c0_1 = arith.constant 0 : index
    %3 = vector.load %arg2[%c0, %c0_1] : memref<256x8xf32, #tpu.memory_space<vmem>>, vector<256x8xf32>
    %c0_2 = arith.constant 0 : index
    %c0_3 = arith.constant 0 : index
    %4 = vector.load %arg3[%c0_2, %c0_3] : memref<1x8xf32, #tpu.memory_space<vmem>>, vector<1x8xf32>
    %cst = arith.constant dense<0.000000e+00> : vector<8xf32>
    %5 = vector.multi_reduction <add>, %3, %cst [0] : vector<256x8xf32> to vector<8xf32>
    %6 = vector.shape_cast %5 : vector<8xf32> to vector<1x8xf32>
    %7 = arith.addf %4, %6 : vector<1x8xf32>
    %c0_4 = arith.constant 0 : index
    %c0_5 = arith.constant 0 : index
    %8 = vector.load %arg3[%c0_4, %c0_5] : memref<1x8xf32, #tpu.memory_space<vmem>>, vector<1x8xf32>
    tpu.vector_store %arg3[%c0_4, %c0_5], %7 {strides = array<i32>} : memref<1x8xf32, #tpu.memory_space<vmem>>, vector<1x8xf32>,
    %c0_6 = arith.constant 0 : index
    %c0_7 = arith.constant 0 : index
    %9 = vector.load %arg4[%c0_6, %c0_7] : memref<1x8xf32, #tpu.memory_space<vmem>>, vector<1x8xf32>
    %10 = arith.mulf %3, %3 : vector<256x8xf32>
    %cst_8 = arith.constant dense<0.000000e+00> : vector<8xf32>
    %11 = vector.multi_reduction <add>, %10, %cst_8 [0] : vector<256x8xf32> to vector<8xf32>
    %12 = vector.shape_cast %11 : vector<8xf32> to vector<1x8xf32>
    %13 = arith.addf %9, %12 : vector<1x8xf32>
    %c0_9 = arith.constant 0 : index
    %c0_10 = arith.constant 0 : index
    %14 = vector.load %arg4[%c0_9, %c0_10] : memref<1x8xf32, #tpu.memory_space<vmem>>, vector<1x8xf32>
    tpu.vector_store %arg4[%c0_9, %c0_10], %13 {strides = array<i32>} : memref<1x8xf32, #tpu.memory_space<vmem>>, vector<1x8xf32>,
    return
  }
  func.func @transform_0(%arg0: i32, %arg1: i32) -> (i32, i32) {
    %c0_i32 = arith.constant 0 : i32
    return %arg1, %arg0 : i32, i32
  }
  func.func @transform_1(%arg0: i32, %arg1: i32) -> (i32, i32) {
    %c0_i32 = arith.constant 0 : i32
    %c0_i32_0 = arith.constant 0 : i32
    return %c0_i32, %arg0 : i32, i32
  }
  func.func @transform_2(%arg0: i32, %arg1: i32) -> (i32, i32) {
    %c0_i32 = arith.constant 0 : i32
    %c0_i32_0 = arith.constant 0 : i32
    return %c0_i32, %arg0 : i32, i32
  }
}

module attributes {stable_mosaic.version = 11 : i64} {
  func.func @_matmul_kernel(%arg0: i32, %arg1: i32, %arg2: i32, %arg3: memref<256x36xf32, #tpu.memory_space<vmem>>, %arg4: memref<36x8xf32, #tpu.memory_space<vmem>>, %arg5: memref<256x8xf32, #tpu.memory_space<vmem>>, %arg6: memref<256x8xf32, #tpu.memory_space<vmem>>) attributes {dimension_semantics = [#tpu.dimension_semantics<parallel>, #tpu.dimension_semantics<parallel>, #tpu.dimension_semantics<arbitrary>], iteration_bounds = array<i64: 2, 1, 1>, scalar_prefetch = 0 : i64, scratch_operands = 1 : i64, tpu.core_type = #tpu.core_type<tc>, window_params = [{transform_indices = @transform_0, window_bounds = array<i64: 256, 36>}, {transform_indices = @transform_1, window_bounds = array<i64: 36, 8>}, {transform_indices = @transform_2, window_bounds = array<i64: 256, 8>}]} {
    %c0_i32 = arith.constant 0 : i32
    %0 = arith.cmpi eq, %arg2, %c0_i32 : i32
    %1 = arith.extui %0 : i1 to i32
    %c0_i32_0 = arith.constant 0 : i32
    %2 = arith.cmpi ne, %1, %c0_i32_0 : i32
    scf.if %2 {
      %cst_10 = arith.constant 0.000000e+00 : f32
      %12 = vector.broadcast %cst_10 : f32 to vector<256x8xf32>
      %c0_11 = arith.constant 0 : index
      %c0_12 = arith.constant 0 : index
      %13 = vector.load %arg6[%c0_11, %c0_12] : memref<256x8xf32, #tpu.memory_space<vmem>>, vector<256x8xf32>
      tpu.vector_store %arg6[%c0_11, %c0_12], %12 {strides = array<i32>} : memref<256x8xf32, #tpu.memory_space<vmem>>, vector<256x8xf32>,
    } else {
    }
    %c0 = arith.constant 0 : index
    %c0_1 = arith.constant 0 : index
    %3 = vector.load %arg6[%c0, %c0_1] : memref<256x8xf32, #tpu.memory_space<vmem>>, vector<256x8xf32>
    %c0_2 = arith.constant 0 : index
    %c0_3 = arith.constant 0 : index
    %4 = vector.load %arg3[%c0_2, %c0_3] : memref<256x36xf32, #tpu.memory_space<vmem>>, vector<256x36xf32>
    %c0_4 = arith.constant 0 : index
    %c0_5 = arith.constant 0 : index
    %5 = vector.load %arg4[%c0_4, %c0_5] : memref<36x8xf32, #tpu.memory_space<vmem>>, vector<36x8xf32>
    %cst = arith.constant dense<0.000000e+00> : vector<256x8xf32>
    %6 = tpu.matmul %4, %5, %cst {dimension_numbers = #tpu.dot_dimension_numbers<[1], [0], [0], [1], [0, 0, 1, 1], [], []>} : vector<256x36xf32>, vector<36x8xf32>, vector<256x8xf32> -> vector<256x8xf32>
    %7 = arith.addf %3, %6 : vector<256x8xf32>
    %c0_6 = arith.constant 0 : index
    %c0_7 = arith.constant 0 : index
    %8 = vector.load %arg6[%c0_6, %c0_7] : memref<256x8xf32, #tpu.memory_space<vmem>>, vector<256x8xf32>
    tpu.vector_store %arg6[%c0_6, %c0_7], %7 {strides = array<i32>} : memref<256x8xf32, #tpu.memory_space<vmem>>, vector<256x8xf32>,
    %c0_i32_8 = arith.constant 0 : i32
    %9 = arith.cmpi eq, %arg2, %c0_i32_8 : i32
    %10 = arith.extui %9 : i1 to i32
    %c0_i32_9 = arith.constant 0 : i32
    %11 = arith.cmpi ne, %10, %c0_i32_9 : i32
    scf.if %11 {
      %c0_10 = arith.constant 0 : index
      %c0_11 = arith.constant 0 : index
      %12 = vector.load %arg6[%c0_10, %c0_11] : memref<256x8xf32, #tpu.memory_space<vmem>>, vector<256x8xf32>
      %c0_12 = arith.constant 0 : index
      %c0_13 = arith.constant 0 : index
      %13 = vector.load %arg5[%c0_12, %c0_13] : memref<256x8xf32, #tpu.memory_space<vmem>>, vector<256x8xf32>
      tpu.vector_store %arg5[%c0_12, %c0_13], %12 {strides = array<i32>} : memref<256x8xf32, #tpu.memory_space<vmem>>, vector<256x8xf32>,
    } else {
    }
    return
  }
  func.func @transform_0(%arg0: i32, %arg1: i32, %arg2: i32) -> (i32, i32) {
    %c0_i32 = arith.constant 0 : i32
    return %arg0, %arg2 : i32, i32
  }
  func.func @transform_1(%arg0: i32, %arg1: i32, %arg2: i32) -> (i32, i32) {
    %c0_i32 = arith.constant 0 : i32
    return %arg2, %arg1 : i32, i32
  }
  func.func @transform_2(%arg0: i32, %arg1: i32, %arg2: i32) -> (i32, i32) {
    %c0_i32 = arith.constant 0 : i32
    return %arg0, %arg1 : i32, i32
  }
}

module attributes {stable_mosaic.version = 11 : i64} {
  func.func @_bn_apply_kernel(%arg0: i32, %arg1: i32, %arg2: memref<256x8xf32, #tpu.memory_space<vmem>>, %arg3: memref<1x8xf32, #tpu.memory_space<vmem>>, %arg4: memref<1x8xf32, #tpu.memory_space<vmem>>, %arg5: memref<256x8xf32, #tpu.memory_space<vmem>>) attributes {dimension_semantics = [#tpu.dimension_semantics<parallel>, #tpu.dimension_semantics<parallel>], iteration_bounds = array<i64: 2, 1>, scalar_prefetch = 0 : i64, scratch_operands = 0 : i64, tpu.core_type = #tpu.core_type<tc>, window_params = [{transform_indices = @transform_0, window_bounds = array<i64: 256, 8>}, {transform_indices = @transform_1, window_bounds = array<i64: 1, 8>}, {transform_indices = @transform_2, window_bounds = array<i64: 1, 8>}, {transform_indices = @transform_3, window_bounds = array<i64: 256, 8>}]} {
    %c0 = arith.constant 0 : index
    %c0_0 = arith.constant 0 : index
    %0 = vector.load %arg2[%c0, %c0_0] : memref<256x8xf32, #tpu.memory_space<vmem>>, vector<256x8xf32>
    %c0_1 = arith.constant 0 : index
    %c0_2 = arith.constant 0 : index
    %1 = vector.load %arg3[%c0_1, %c0_2] : memref<1x8xf32, #tpu.memory_space<vmem>>, vector<1x8xf32>
    %2 = vector.broadcast %1 : vector<1x8xf32> to vector<256x8xf32>
    %3 = arith.mulf %0, %2 : vector<256x8xf32>
    %c0_3 = arith.constant 0 : index
    %c0_4 = arith.constant 0 : index
    %4 = vector.load %arg4[%c0_3, %c0_4] : memref<1x8xf32, #tpu.memory_space<vmem>>, vector<1x8xf32>
    %5 = vector.broadcast %4 : vector<1x8xf32> to vector<256x8xf32>
    %6 = arith.addf %3, %5 : vector<256x8xf32>
    %cst = arith.constant 0.000000e+00 : f32
    %7 = vector.broadcast %cst : f32 to vector<256x8xf32>
    %8 = arith.maximumf %6, %7 : vector<256x8xf32>
    %c0_5 = arith.constant 0 : index
    %c0_6 = arith.constant 0 : index
    %9 = vector.load %arg5[%c0_5, %c0_6] : memref<256x8xf32, #tpu.memory_space<vmem>>, vector<256x8xf32>
    tpu.vector_store %arg5[%c0_5, %c0_6], %8 {strides = array<i32>} : memref<256x8xf32, #tpu.memory_space<vmem>>, vector<256x8xf32>,
    return
  }
  func.func @transform_0(%arg0: i32, %arg1: i32) -> (i32, i32) {
    %c0_i32 = arith.constant 0 : i32
    return %arg0, %arg1 : i32, i32
  }
  func.func @transform_1(%arg0: i32, %arg1: i32) -> (i32, i32) {
    %c0_i32 = arith.constant 0 : i32
    %c0_i32_0 = arith.constant 0 : i32
    return %c0_i32, %arg1 : i32, i32
  }
  func.func @transform_2(%arg0: i32, %arg1: i32) -> (i32, i32) {
    %c0_i32 = arith.constant 0 : i32
    %c0_i32_0 = arith.constant 0 : i32
    return %c0_i32, %arg1 : i32, i32
  }
  func.func @transform_3(%arg0: i32, %arg1: i32) -> (i32, i32) {
    %c0_i32 = arith.constant 0 : i32
    return %arg0, %arg1 : i32, i32
  }
}

module attributes {stable_mosaic.version = 11 : i64} {
  func.func @_matmul_kernel(%arg0: i32, %arg1: i32, %arg2: i32, %arg3: memref<256x8xf32, #tpu.memory_space<vmem>>, %arg4: memref<8x32xf32, #tpu.memory_space<vmem>>, %arg5: memref<256x32xf32, #tpu.memory_space<vmem>>, %arg6: memref<256x32xf32, #tpu.memory_space<vmem>>) attributes {dimension_semantics = [#tpu.dimension_semantics<parallel>, #tpu.dimension_semantics<parallel>, #tpu.dimension_semantics<arbitrary>], iteration_bounds = array<i64: 2, 1, 1>, scalar_prefetch = 0 : i64, scratch_operands = 1 : i64, tpu.core_type = #tpu.core_type<tc>, window_params = [{transform_indices = @transform_0, window_bounds = array<i64: 256, 8>}, {transform_indices = @transform_1, window_bounds = array<i64: 8, 32>}, {transform_indices = @transform_2, window_bounds = array<i64: 256, 32>}]} {
    %c0_i32 = arith.constant 0 : i32
    %0 = arith.cmpi eq, %arg2, %c0_i32 : i32
    %1 = arith.extui %0 : i1 to i32
    %c0_i32_0 = arith.constant 0 : i32
    %2 = arith.cmpi ne, %1, %c0_i32_0 : i32
    scf.if %2 {
      %cst_10 = arith.constant 0.000000e+00 : f32
      %12 = vector.broadcast %cst_10 : f32 to vector<256x32xf32>
      %c0_11 = arith.constant 0 : index
      %c0_12 = arith.constant 0 : index
      %13 = vector.load %arg6[%c0_11, %c0_12] : memref<256x32xf32, #tpu.memory_space<vmem>>, vector<256x32xf32>
      tpu.vector_store %arg6[%c0_11, %c0_12], %12 {strides = array<i32>} : memref<256x32xf32, #tpu.memory_space<vmem>>, vector<256x32xf32>,
    } else {
    }
    %c0 = arith.constant 0 : index
    %c0_1 = arith.constant 0 : index
    %3 = vector.load %arg6[%c0, %c0_1] : memref<256x32xf32, #tpu.memory_space<vmem>>, vector<256x32xf32>
    %c0_2 = arith.constant 0 : index
    %c0_3 = arith.constant 0 : index
    %4 = vector.load %arg3[%c0_2, %c0_3] : memref<256x8xf32, #tpu.memory_space<vmem>>, vector<256x8xf32>
    %c0_4 = arith.constant 0 : index
    %c0_5 = arith.constant 0 : index
    %5 = vector.load %arg4[%c0_4, %c0_5] : memref<8x32xf32, #tpu.memory_space<vmem>>, vector<8x32xf32>
    %cst = arith.constant dense<0.000000e+00> : vector<256x32xf32>
    %6 = tpu.matmul %4, %5, %cst {dimension_numbers = #tpu.dot_dimension_numbers<[1], [0], [0], [1], [0, 0, 1, 1], [], []>} : vector<256x8xf32>, vector<8x32xf32>, vector<256x32xf32> -> vector<256x32xf32>
    %7 = arith.addf %3, %6 : vector<256x32xf32>
    %c0_6 = arith.constant 0 : index
    %c0_7 = arith.constant 0 : index
    %8 = vector.load %arg6[%c0_6, %c0_7] : memref<256x32xf32, #tpu.memory_space<vmem>>, vector<256x32xf32>
    tpu.vector_store %arg6[%c0_6, %c0_7], %7 {strides = array<i32>} : memref<256x32xf32, #tpu.memory_space<vmem>>, vector<256x32xf32>,
    %c0_i32_8 = arith.constant 0 : i32
    %9 = arith.cmpi eq, %arg2, %c0_i32_8 : i32
    %10 = arith.extui %9 : i1 to i32
    %c0_i32_9 = arith.constant 0 : i32
    %11 = arith.cmpi ne, %10, %c0_i32_9 : i32
    scf.if %11 {
      %c0_10 = arith.constant 0 : index
      %c0_11 = arith.constant 0 : index
      %12 = vector.load %arg6[%c0_10, %c0_11] : memref<256x32xf32, #tpu.memory_space<vmem>>, vector<256x32xf32>
      %c0_12 = arith.constant 0 : index
      %c0_13 = arith.constant 0 : index
      %13 = vector.load %arg5[%c0_12, %c0_13] : memref<256x32xf32, #tpu.memory_space<vmem>>, vector<256x32xf32>
      tpu.vector_store %arg5[%c0_12, %c0_13], %12 {strides = array<i32>} : memref<256x32xf32, #tpu.memory_space<vmem>>, vector<256x32xf32>,
    } else {
    }
    return
  }
  func.func @transform_0(%arg0: i32, %arg1: i32, %arg2: i32) -> (i32, i32) {
    %c0_i32 = arith.constant 0 : i32
    return %arg0, %arg2 : i32, i32
  }
  func.func @transform_1(%arg0: i32, %arg1: i32, %arg2: i32) -> (i32, i32) {
    %c0_i32 = arith.constant 0 : i32
    return %arg2, %arg1 : i32, i32
  }
  func.func @transform_2(%arg0: i32, %arg1: i32, %arg2: i32) -> (i32, i32) {
    %c0_i32 = arith.constant 0 : i32
    return %arg0, %arg1 : i32, i32
  }
}

module attributes {stable_mosaic.version = 11 : i64} {
  func.func @_bn_stats_kernel(%arg0: i32, %arg1: i32, %arg2: memref<256x32xf32, #tpu.memory_space<vmem>>, %arg3: memref<1x32xf32, #tpu.memory_space<vmem>>, %arg4: memref<1x32xf32, #tpu.memory_space<vmem>>) attributes {dimension_semantics = [#tpu.dimension_semantics<parallel>, #tpu.dimension_semantics<arbitrary>], iteration_bounds = array<i64: 1, 2>, scalar_prefetch = 0 : i64, scratch_operands = 0 : i64, tpu.core_type = #tpu.core_type<tc>, window_params = [{transform_indices = @transform_0, window_bounds = array<i64: 256, 32>}, {transform_indices = @transform_1, window_bounds = array<i64: 1, 32>}, {transform_indices = @transform_2, window_bounds = array<i64: 1, 32>}]} {
    %c0_i32 = arith.constant 0 : i32
    %0 = arith.cmpi eq, %arg1, %c0_i32 : i32
    %1 = arith.extui %0 : i1 to i32
    %c0_i32_0 = arith.constant 0 : i32
    %2 = arith.cmpi ne, %1, %c0_i32_0 : i32
    scf.if %2 {
      %cst_11 = arith.constant 0.000000e+00 : f32
      %15 = vector.broadcast %cst_11 : f32 to vector<1x32xf32>
      %c0_12 = arith.constant 0 : index
      %c0_13 = arith.constant 0 : index
      %16 = vector.load %arg3[%c0_12, %c0_13] : memref<1x32xf32, #tpu.memory_space<vmem>>, vector<1x32xf32>
      tpu.vector_store %arg3[%c0_12, %c0_13], %15 {strides = array<i32>} : memref<1x32xf32, #tpu.memory_space<vmem>>, vector<1x32xf32>,
      %cst_14 = arith.constant 0.000000e+00 : f32
      %17 = vector.broadcast %cst_14 : f32 to vector<1x32xf32>
      %c0_15 = arith.constant 0 : index
      %c0_16 = arith.constant 0 : index
      %18 = vector.load %arg4[%c0_15, %c0_16] : memref<1x32xf32, #tpu.memory_space<vmem>>, vector<1x32xf32>
      tpu.vector_store %arg4[%c0_15, %c0_16], %17 {strides = array<i32>} : memref<1x32xf32, #tpu.memory_space<vmem>>, vector<1x32xf32>,
    } else {
    }
    %c0 = arith.constant 0 : index
    %c0_1 = arith.constant 0 : index
    %3 = vector.load %arg2[%c0, %c0_1] : memref<256x32xf32, #tpu.memory_space<vmem>>, vector<256x32xf32>
    %c0_2 = arith.constant 0 : index
    %c0_3 = arith.constant 0 : index
    %4 = vector.load %arg3[%c0_2, %c0_3] : memref<1x32xf32, #tpu.memory_space<vmem>>, vector<1x32xf32>
    %cst = arith.constant dense<0.000000e+00> : vector<32xf32>
    %5 = vector.multi_reduction <add>, %3, %cst [0] : vector<256x32xf32> to vector<32xf32>
    %6 = vector.shape_cast %5 : vector<32xf32> to vector<1x32xf32>
    %7 = arith.addf %4, %6 : vector<1x32xf32>
    %c0_4 = arith.constant 0 : index
    %c0_5 = arith.constant 0 : index
    %8 = vector.load %arg3[%c0_4, %c0_5] : memref<1x32xf32, #tpu.memory_space<vmem>>, vector<1x32xf32>
    tpu.vector_store %arg3[%c0_4, %c0_5], %7 {strides = array<i32>} : memref<1x32xf32, #tpu.memory_space<vmem>>, vector<1x32xf32>,
    %c0_6 = arith.constant 0 : index
    %c0_7 = arith.constant 0 : index
    %9 = vector.load %arg4[%c0_6, %c0_7] : memref<1x32xf32, #tpu.memory_space<vmem>>, vector<1x32xf32>
    %10 = arith.mulf %3, %3 : vector<256x32xf32>
    %cst_8 = arith.constant dense<0.000000e+00> : vector<32xf32>
    %11 = vector.multi_reduction <add>, %10, %cst_8 [0] : vector<256x32xf32> to vector<32xf32>
    %12 = vector.shape_cast %11 : vector<32xf32> to vector<1x32xf32>
    %13 = arith.addf %9, %12 : vector<1x32xf32>
    %c0_9 = arith.constant 0 : index
    %c0_10 = arith.constant 0 : index
    %14 = vector.load %arg4[%c0_9, %c0_10] : memref<1x32xf32, #tpu.memory_space<vmem>>, vector<1x32xf32>
    tpu.vector_store %arg4[%c0_9, %c0_10], %13 {strides = array<i32>} : memref<1x32xf32, #tpu.memory_space<vmem>>, vector<1x32xf32>,
    return
  }
  func.func @transform_0(%arg0: i32, %arg1: i32) -> (i32, i32) {
    %c0_i32 = arith.constant 0 : i32
    return %arg1, %arg0 : i32, i32
  }
  func.func @transform_1(%arg0: i32, %arg1: i32) -> (i32, i32) {
    %c0_i32 = arith.constant 0 : i32
    %c0_i32_0 = arith.constant 0 : i32
    return %c0_i32, %arg0 : i32, i32
  }
  func.func @transform_2(%arg0: i32, %arg1: i32) -> (i32, i32) {
    %c0_i32 = arith.constant 0 : i32
    %c0_i32_0 = arith.constant 0 : i32
    return %c0_i32, %arg0 : i32, i32
  }
}

module attributes {stable_mosaic.version = 11 : i64} {
  func.func @_bn_apply_kernel(%arg0: i32, %arg1: i32, %arg2: memref<256x32xf32, #tpu.memory_space<vmem>>, %arg3: memref<1x32xf32, #tpu.memory_space<vmem>>, %arg4: memref<1x32xf32, #tpu.memory_space<vmem>>, %arg5: memref<256x32xf32, #tpu.memory_space<vmem>>) attributes {dimension_semantics = [#tpu.dimension_semantics<parallel>, #tpu.dimension_semantics<parallel>], iteration_bounds = array<i64: 2, 1>, scalar_prefetch = 0 : i64, scratch_operands = 0 : i64, tpu.core_type = #tpu.core_type<tc>, window_params = [{transform_indices = @transform_0, window_bounds = array<i64: 256, 32>}, {transform_indices = @transform_1, window_bounds = array<i64: 1, 32>}, {transform_indices = @transform_2, window_bounds = array<i64: 1, 32>}, {transform_indices = @transform_3, window_bounds = array<i64: 256, 32>}]} {
    %c0 = arith.constant 0 : index
    %c0_0 = arith.constant 0 : index
    %0 = vector.load %arg2[%c0, %c0_0] : memref<256x32xf32, #tpu.memory_space<vmem>>, vector<256x32xf32>
    %c0_1 = arith.constant 0 : index
    %c0_2 = arith.constant 0 : index
    %1 = vector.load %arg3[%c0_1, %c0_2] : memref<1x32xf32, #tpu.memory_space<vmem>>, vector<1x32xf32>
    %2 = vector.broadcast %1 : vector<1x32xf32> to vector<256x32xf32>
    %3 = arith.mulf %0, %2 : vector<256x32xf32>
    %c0_3 = arith.constant 0 : index
    %c0_4 = arith.constant 0 : index
    %4 = vector.load %arg4[%c0_3, %c0_4] : memref<1x32xf32, #tpu.memory_space<vmem>>, vector<1x32xf32>
    %5 = vector.broadcast %4 : vector<1x32xf32> to vector<256x32xf32>
    %6 = arith.addf %3, %5 : vector<256x32xf32>
    %c0_5 = arith.constant 0 : index
    %c0_6 = arith.constant 0 : index
    %7 = vector.load %arg5[%c0_5, %c0_6] : memref<256x32xf32, #tpu.memory_space<vmem>>, vector<256x32xf32>
    tpu.vector_store %arg5[%c0_5, %c0_6], %6 {strides = array<i32>} : memref<256x32xf32, #tpu.memory_space<vmem>>, vector<256x32xf32>,
    return
  }
  func.func @transform_0(%arg0: i32, %arg1: i32) -> (i32, i32) {
    %c0_i32 = arith.constant 0 : i32
    return %arg0, %arg1 : i32, i32
  }
  func.func @transform_1(%arg0: i32, %arg1: i32) -> (i32, i32) {
    %c0_i32 = arith.constant 0 : i32
    %c0_i32_0 = arith.constant 0 : i32
    return %c0_i32, %arg1 : i32, i32
  }
  func.func @transform_2(%arg0: i32, %arg1: i32) -> (i32, i32) {
    %c0_i32 = arith.constant 0 : i32
    %c0_i32_0 = arith.constant 0 : i32
    return %c0_i32, %arg1 : i32, i32
  }
  func.func @transform_3(%arg0: i32, %arg1: i32) -> (i32, i32) {
    %c0_i32 = arith.constant 0 : i32
    return %arg0, %arg1 : i32, i32
  }
}

</mosaic_0001>

<bundles_post_ra>
// kernel: lsn_later_forward.7
= control target key start
LH: loop header
LB: loop body
LE: loop exit
PB: predicated region body
PF: predicated region fallthrough
CT: control target
= control target key end

     0   :  { %s545_s9 = smov 0   ;;  %s547_s10 = smov 0   ;;  %s693_s0 = inlined_call_operand.vmem [shape: f32[512,8], index: 0, kind: input, shape index: {}]   ;;  %s694_s1 = inlined_call_operand.vmem [shape: f32[1,8], index: 1, kind: output, shape index: {0}]   ;;  %s695_s2 = inlined_call_operand.vmem [shape: f32[1,8], index: 2, kind: output, shape index: {1}]  }
   0x1   :  { %s549_s11 = smov 0  }
   0x2 LB: > { %s22_s12 = sadd.s32 1, %s523_s10  ;;  %p472_p0 = scmp.ge.s32.totalorder %s527_s11, 1  ;;  %s527_s11 = sphi %s549_s11, %s13_s11   ;;  %s523_s10 = sphi %s547_s10, %s697_s10   ;;  %s519_s9 = sphi %s545_s9, %s696_s9  }
   0x3   : > { %p23_p1 = scmp.ge.s32.totalorder %s22_s12, 2  ;;  %p133_p2 = scmp.lt.s32.totalorder %s527_s11, 3 }
   0x5   : > { %s699_s12 = smov (%p23_p1, %s22_s12), 0  ;;  %p134_p3 = pnand %p472_p0, %p133_p2 }
   0x6   : > { %s473_s13 = sshll.u32 (!%p134_p3), %s519_s9, 5  ;;  %p475_p5 = scmp.ne.s32.totalorder (!%p134_p3), %s519_s9, 0 }
   0x7   : > { %137 = sbr.rel (%p134_p3) target bundleno = 103 (0x67), region = 24  ;;  %p160_p4 = scmp.lt.s32.totalorder (!%p134_p3), %s473_s13, 63 }
   0xc   : > { %s701_s13 = smov (!%p160_p4, %s473_s13), 63  ;;  %177 = sbr.rel (%p475_p5) target bundleno = 19 (0x13), region = 28 }
   0xd   : > { %s474_s14 = sshll.u32 %s701_s13, 3 }
   0xe   : > { %s566_s17 = scalar_lea.vmem %s693_s0, %s474_s14 }
  0x11   : > { %vm178_vm0 = vcmask 57344   ;;  %v529_v0 = vmov 0.0  }
  0x12   : > { %179 = vst.msk [vmem:[%s694_s1] sm:$0x1] %vm178_vm0, %v529_v0  ;;  %180 = vst.msk [vmem:[%s695_s2] sm:$0x1] %vm178_vm0, %v529_v0 }
  0x13 PF: > { %v181_v1 = vld [vmem:[%s566_s17] sm:$0xff]  ;;  %v182_v2 = vld [vmem:[%s566_s17 + $0x8] sm:$0xff]  ;;  %v183_v3 = vld [vmem:[%s566_s17 + $0x10] sm:$0xff]  ;;  %vm214_vm1 = vcmask 64512   ;;  %vm285_vm2 = vcmask 57344  }
  0x14   : > { %v215_v4 = vsel %vm214_vm1, %v181_v1, 0.0  ;;  %v216_v5 = vsel %vm214_vm1, %v182_v2, 0.0  ;;  %v218_v6 = vsel %vm214_vm1, %v183_v3, 0.0  ;;  %v184_v7 = vld [vmem:[%s566_s17 + $0x18] sm:$0xff]  ;;  %v185_v10 = vld [vmem:[%s566_s17 + $0x20] sm:$0xff]  ;;  %v186_v13 = vld [vmem:[%s566_s17 + $0x28] sm:$0xff]  ;;  %v288_v28 = vmul.f32 %v181_v1, %v181_v1 }
  0x15   : > { %v217_v8 = vadd.f32 %v216_v5, %v215_v4  ;;  %v220_v9 = vsel %vm214_vm1, %v184_v7, 0.0  ;;  %v222_v12 = vsel %vm214_vm1, %v185_v10, 0.0  ;;  %v224_v15 = vsel %vm214_vm1, %v186_v13, 0.0  ;;  %v187_v16 = vld [vmem:[%s566_s17 + $0x30] sm:$0xff]  ;;  %v188_v19 = vld [vmem:[%s566_s17 + $0x38] sm:$0xff]  ;;  %v189_v22 = vld [vmem:[%s566_s17 + $0x40] sm:$0xff] }
  0x16   : > { %v226_v18 = vsel %vm214_vm1, %v187_v16, 0.0  ;;  %v228_v21 = vsel %vm214_vm1, %v188_v19, 0.0  ;;  %v230_v24 = vsel %vm214_vm1, %v189_v22, 0.0  ;;  %v190_v25 = vld [vmem:[%s566_s17 + $0x48] sm:$0xff]  ;;  %v289_v29 = vmul.f32 %v182_v2, %v182_v2  ;;  %v191_v31 = vld [vmem:[%s566_s17 + $0x50] sm:$0xff]  ;;  %v192_v33 = vld [vmem:[%s566_s17 + $0x58] sm:$0xff] }
  0x17   : > { %v219_v11 = vadd.f32 %v218_v6, %v217_v8  ;;  %v232_v27 = vsel %vm214_vm1, %v190_v25, 0.0  ;;  %v290_v30 = vmul.f32 %v183_v3, %v183_v3  ;;  %v234_v34 = vsel %vm214_vm1, %v191_v31, 0.0  ;;  %v193_v42 = vld [vmem:[%s566_s17 + $0x60] sm:$0xff]  ;;  %v194_v48 = vld [vmem:[%s566_s17 + $0x68] sm:$0xff]  ;;  %v195_v54 = vld [vmem:[%s566_s17 + $0x70] sm:$0xff] }
  0x18   : > { %v291_v35 = vmul.f32 %v184_v7, %v184_v7  ;;  %v236_v37 = vsel %vm214_vm1, %v192_v33, 0.0  ;;  %v292_v38 = vmul.f32 %v185_v10, %v185_v10  ;;  %v320_v39 = vsel %vm214_vm1, %v288_v28, 0.0  ;;  %v196_v60 = vld [vmem:[%s566_s17 + $0x78] sm:$0xff]  ;;  %v197_v2 = vld [vmem:[%s566_s17 + $0x80] sm:$0xff]  ;;  %v198_v8 = vld [vmem:[%s566_s17 + $0x88] sm:$0xff] }
  0x19   : > { %v221_v14 = vadd.f32 %v220_v9, %v219_v11  ;;  %v321_v40 = vsel %vm214_vm1, %v289_v29, 0.0  ;;  %v323_v41 = vsel %vm214_vm1, %v290_v30, 0.0  ;;  %v238_v45 = vsel %vm214_vm1, %v193_v42, 0.0 }
  0x1a   : > { %v322_v44 = vadd.f32 %v321_v40, %v320_v39  ;;  %v293_v46 = vmul.f32 %v186_v13, %v186_v13  ;;  %v325_v47 = vsel %vm214_vm1, %v291_v35, 0.0  ;;  %v240_v51 = vsel %vm214_vm1, %v194_v48, 0.0 }
  0x1b   : > { %v223_v17 = vadd.f32 %v222_v12, %v221_v14  ;;  %v294_v52 = vmul.f32 %v187_v16, %v187_v16  ;;  %v327_v53 = vsel %vm214_vm1, %v292_v38, 0.0  ;;  %v242_v57 = vsel %vm214_vm1, %v195_v54, 0.0  ;;  %v199_v14 = vld [vmem:[%s566_s17 + $0x90] sm:$0xff] }
  0x1c   : > { %v324_v50 = vadd.f32 %v323_v41, %v322_v44  ;;  %v295_v58 = vmul.f32 %v188_v19, %v188_v19  ;;  %v329_v59 = vsel %vm214_vm1, %v293_v46, 0.0  ;;  %v244_v63 = vsel %vm214_vm1, %v196_v60, 0.0  ;;  %v203_v38 = vld [vmem:[%s566_s17 + $0xb0] sm:$0xff]  ;;  %v204_v44 = vld [vmem:[%s566_s17 + $0xb8] sm:$0xff] }
  0x1d   : > { %v225_v20 = vadd.f32 %v224_v15, %v223_v17  ;;  %v296_v0 = vmul.f32 %v189_v22, %v189_v22  ;;  %v331_v1 = vsel %vm214_vm1, %v294_v52, 0.0  ;;  %v246_v5 = vsel %vm214_vm1, %v197_v2, 0.0 }
  0x1e   : > { %v326_v56 = vadd.f32 %v325_v47, %v324_v50  ;;  %v297_v6 = vmul.f32 %v190_v25, %v190_v25  ;;  %v333_v7 = vsel %vm214_vm1, %v295_v58, 0.0  ;;  %v248_v11 = vsel %vm214_vm1, %v198_v8, 0.0  ;;  %v205_v50 = vld [vmem:[%s566_s17 + $0xc0] sm:$0xff] }
  0x1f   : > { %v227_v23 = vadd.f32 %v226_v18, %v225_v20  ;;  %v298_v12 = vmul.f32 %v191_v31, %v191_v31  ;;  %v335_v13 = vsel %vm214_vm1, %v296_v0, 0.0  ;;  %v250_v17 = vsel %vm214_vm1, %v199_v14, 0.0  ;;  %v200_v20 = vld [vmem:[%s566_s17 + $0x98] sm:$0xff] }
  0x20   : > { %v328_v62 = vadd.f32 %v327_v53, %v326_v56  ;;  %v299_v18 = vmul.f32 %v192_v33, %v192_v33  ;;  %v337_v19 = vsel %vm214_vm1, %v297_v6, 0.0  ;;  %v301_v30 = vmul.f32 %v194_v48, %v194_v48  ;;  %v206_v56 = vld [vmem:[%s566_s17 + $0xc8] sm:$0xff] }
  0x21   : > { %v229_v26 = vadd.f32 %v228_v21, %v227_v23  ;;  %v252_v23 = vsel %vm214_vm1, %v200_v20, 0.0  ;;  %v339_v25 = vsel %vm214_vm1, %v298_v12, 0.0  ;;  %v258_v41 = vsel %vm214_vm1, %v203_v38, 0.0 }
  0x22   : > { %v330_v4 = vadd.f32 %v329_v59, %v328_v62  ;;  %v341_v31 = vsel %vm214_vm1, %v299_v18, 0.0  ;;  %v260_v47 = vsel %vm214_vm1, %v204_v44, 0.0  ;;  %v304_v48 = vmul.f32 %v197_v2, %v197_v2  ;;  %v207_v62 = vld [vmem:[%s566_s17 + $0xd0] sm:$0xff] }
  0x23   : > { %v231_v32 = vadd.f32 %v230_v24, %v229_v26  ;;  %v300_v24 = vmul.f32 %v193_v42, %v193_v42  ;;  %v201_v26 = vld [vmem:[%s566_s17 + $0xa0] sm:$0xff]  ;;  %v303_v42 = vmul.f32 %v196_v60, %v196_v60  ;;  %v262_v53 = vsel %vm214_vm1, %v205_v50, 0.0 }
  0x24   : > { %v332_v10 = vadd.f32 %v331_v1, %v330_v4  ;;  %v254_v29 = vsel %vm214_vm1, %v201_v26, 0.0  ;;  %v264_v59 = vsel %vm214_vm1, %v206_v56, 0.0  ;;  %v306_v60 = vmul.f32 %v199_v14, %v199_v14  ;;  %v208_v4 = vld [vmem:[%s566_s17 + $0xd8] sm:$0xff] }
  0x25   : > { %v233_v36 = vadd.f32 %v232_v27, %v231_v32  ;;  %v202_v32 = vld [vmem:[%s566_s17 + $0xa8] sm:$0xff]  ;;  %v266_v1 = vsel %vm214_vm1, %v207_v62, 0.0  ;;  %v307_v2 = vmul.f32 %v200_v20, %v200_v20  ;;  %v310_v20 = vmul.f32 %v203_v38, %v203_v38 }
  0x26   : > { %v334_v16 = vadd.f32 %v333_v7, %v332_v10  ;;  %v256_v35 = vsel %vm214_vm1, %v202_v32, 0.0  ;;  %v268_v7 = vsel %vm214_vm1, %v208_v4, 0.0  ;;  %v209_v10 = vld [vmem:[%s566_s17 + $0xe0] sm:$0xff]  ;;  %v309_v14 = vmul.f32 %v202_v32, %v202_v32 }
  0x27   : > { %v235_v43 = vadd.f32 %v234_v34, %v233_v36  ;;  %v302_v36 = vmul.f32 %v195_v54, %v195_v54  ;;  %v305_v54 = vmul.f32 %v198_v8, %v198_v8  ;;  %v308_v8 = vmul.f32 %v201_v26, %v201_v26 }
  0x28   : > { %v336_v22 = vadd.f32 %v335_v13, %v334_v16  ;;  %v270_v13 = vsel %vm214_vm1, %v209_v10, 0.0  ;;  %v210_v16 = vld [vmem:[%s566_s17 + $0xe8] sm:$0xff]  ;;  %v311_v26 = vmul.f32 %v204_v44, %v204_v44  ;;  %v312_v32 = vmul.f32 %v205_v50, %v205_v50 }
  0x29   : > { %v237_v49 = vadd.f32 %v236_v37, %v235_v43  ;;  %v343_v37 = vsel %vm214_vm1, %v300_v24, 0.0  ;;  %v345_v43 = vsel %vm214_vm1, %v301_v30, 0.0  ;;  %v315_v44 = vmul.f32 %v208_v4, %v208_v4 }
  0x2a   : > { %v338_v28 = vadd.f32 %v337_v19, %v336_v22  ;;  %v272_v19 = vsel %vm214_vm1, %v210_v16, 0.0  ;;  %v211_v22 = vld [vmem:[%s566_s17 + $0xf0] sm:$0xff] }
  0x2b   : > { %v239_v55 = vadd.f32 %v238_v45, %v237_v49  ;;  %v347_v49 = vsel %vm214_vm1, %v302_v36, 0.0  ;;  %v313_v36 = vmul.f32 %v206_v56, %v206_v56  ;;  %v318_v56 = vmul.f32 %v211_v22, %v211_v22 }
  0x2c   : > { %v340_v34 = vadd.f32 %v339_v25, %v338_v28  ;;  %v274_v25 = vsel %vm214_vm1, %v211_v22, 0.0  ;;  %v212_v28 = vld [vmem:[%s566_s17 + $0xf8] sm:$0xff] }
  0x2d   : > { %v241_v61 = vadd.f32 %v240_v51, %v239_v55  ;;  %v349_v55 = vsel %vm214_vm1, %v303_v42, 0.0 }
  0x2e   : > { %v342_v40 = vadd.f32 %v341_v31, %v340_v34  ;;  %v276_v31 = vsel %vm214_vm1, %v212_v28, 0.0 }
  0x2f   : > { %v243_v3 = vadd.f32 %v242_v57, %v241_v61  ;;  %v351_v61 = vsel %vm214_vm1, %v304_v48, 0.0  ;;  %v316_v48 = vmul.f32 %v209_v10, %v209_v10 }
  0x30   : > { %v344_v46 = vadd.f32 %v343_v37, %v342_v40  ;;  %v365_v37 = vsel %vm214_vm1, %v311_v26, 0.0  ;;  %v314_v40 = vmul.f32 %v207_v62, %v207_v62 }
  0x31   : > { %v245_v9 = vadd.f32 %v244_v63, %v243_v3  ;;  %v353_v3 = vsel %vm214_vm1, %v305_v54, 0.0 }
  0x32   : > { %v346_v52 = vadd.f32 %v345_v43, %v344_v46 }
  0x33   : > { %v247_v15 = vadd.f32 %v246_v5, %v245_v9  ;;  %v355_v9 = vsel %vm214_vm1, %v306_v60, 0.0  ;;  %v213_v60 = vld [vmem:[%s694_s1] sm:$0x1] }
  0x34   : > { %v348_v58 = vadd.f32 %v347_v49, %v346_v52  ;;  %v371_v49 = vsel %vm214_vm1, %v314_v40, 0.0  ;;  %v317_v52 = vmul.f32 %v210_v16, %v210_v16 }
  0x35   : > { %v249_v21 = vadd.f32 %v248_v11, %v247_v15  ;;  %v357_v15 = vsel %vm214_vm1, %v307_v2, 0.0 }
  0x36   : > { %v350_v0 = vadd.f32 %v349_v55, %v348_v58  ;;  %v377_v62 = vsel %vm214_vm1, %v317_v52, 0.0 }
  0x37   : > { %v251_v27 = vadd.f32 %v250_v17, %v249_v21  ;;  %v359_v21 = vsel %vm214_vm1, %v308_v8, 0.0 }
  0x38   : > { %v352_v6 = vadd.f32 %v351_v61, %v350_v0  ;;  %v319_v61 = vmul.f32 %v212_v28, %v212_v28 }
  0x39   : > { %v253_v33 = vadd.f32 %v252_v23, %v251_v27  ;;  %v361_v27 = vsel %vm214_vm1, %v309_v14, 0.0 }
  0x3a   : > { %v354_v12 = vadd.f32 %v353_v3, %v352_v6  ;;  %v381_v4 = vsel %vm214_vm1, %v319_v61, 0.0 }
  0x3b   : > { %v255_v39 = vadd.f32 %v254_v29, %v253_v33  ;;  %v363_v33 = vsel %vm214_vm1, %v310_v20, 0.0 }
  0x3c   : > { %v356_v18 = vadd.f32 %v355_v9, %v354_v12  ;;  %v287_v12 = vld [vmem:[%s695_s2] sm:$0x1] }
  0x3d   : > { %v257_v45 = vadd.f32 %v256_v35, %v255_v39 }
  0x3e   : > { %v358_v24 = vadd.f32 %v357_v15, %v356_v18 }
  0x3f   : > { %v259_v51 = vadd.f32 %v258_v41, %v257_v45  ;;  %v367_v41 = vsel %vm214_vm1, %v312_v32, 0.0  ;;  %v369_v45 = vsel %vm214_vm1, %v313_v36, 0.0 }
  0x40   : > { %v360_v30 = vadd.f32 %v359_v21, %v358_v24 }
  0x41   : > { %v261_v57 = vadd.f32 %v260_v47, %v259_v51 }
  0x42   : > { %v362_v35 = vadd.f32 %v361_v27, %v360_v30 }
  0x43   : > { %v263_v63 = vadd.f32 %v262_v53, %v261_v57  ;;  %v373_v53 = vsel %vm214_vm1, %v315_v44, 0.0  ;;  %v375_v57 = vsel %vm214_vm1, %v316_v48, 0.0 }
  0x44   : > { %v364_v39 = vadd.f32 %v363_v33, %v362_v35 }
  0x45   : > { %v265_v5 = vadd.f32 %v264_v59, %v263_v63 }
  0x46   : > { %v366_v43 = vadd.f32 %v365_v37, %v364_v39 }
  0x47   : > { %v267_v11 = vadd.f32 %v266_v1, %v265_v5  ;;  %v379_v1 = vsel %vm214_vm1, %v318_v56, 0.0 }
  0x48   : > { %v368_v47 = vadd.f32 %v367_v41, %v366_v43 }
  0x49   : > { %v269_v17 = vadd.f32 %v268_v7, %v267_v11 }
  0x4a   : > { %v370_v51 = vadd.f32 %v369_v45, %v368_v47 }
  0x4b   : > { %v271_v23 = vadd.f32 %v270_v13, %v269_v17 }
  0x4c   : > { %v372_v55 = vadd.f32 %v371_v49, %v370_v51 }
  0x4d   : > { %v273_v29 = vadd.f32 %v272_v19, %v271_v23 }
  0x4e   : > { %v374_v59 = vadd.f32 %v373_v53, %v372_v55 }
  0x4f   : > { %v275_v34 = vadd.f32 %v274_v25, %v273_v29 }
  0x50   : > { %v376_v0 = vadd.f32 %v375_v57, %v374_v59 }
  0x51   : > { %v277_v38 = vadd.f32 %v276_v31, %v275_v34 }
  0x52   : > { %v378_v3 = vadd.f32 %v377_v62, %v376_v0 }
  0x53   : > { %v278_v42 = vrot.slane %v277_v38, 4 }
  0x54   : > { %v380_v5 = vadd.f32 %v379_v1, %v378_v3 }
  0x55   : > { %v279_v46 = vadd.f32 %v278_v42, %v277_v38 }
  0x56   : > { %v382_v6 = vadd.f32 %v381_v4, %v380_v5 }
  0x57   : > { %v280_v50 = vrot.slane %v279_v46, 2 }
  0x58   : > { %v383_v7 = vrot.slane %v382_v6, 4 }
  0x59   : > { %v281_v54 = vadd.f32 %v280_v50, %v279_v46 }
  0x5a   : > { %v384_v8 = vadd.f32 %v383_v7, %v382_v6 }
  0x5b   : > { %v282_v58 = vrot.slane %v281_v54, 1 }
  0x5c   : > { %v385_v9 = vrot.slane %v384_v8, 2 }
  0x5d   : > { %v283_v63 = vadd.f32 %v282_v58, %v281_v54 }
  0x5e   : > { %v386_v10 = vadd.f32 %v385_v9, %v384_v8 }
  0x5f   : > { %v284_v2 = vadd.f32 %v283_v63, %v213_v60 }
  0x60   : > { %v387_v11 = vrot.slane %v386_v10, 1 }
  0x61   : > { %286 = vst.msk [vmem:[%s694_s1] sm:$0x1] %vm285_vm2, %v284_v2 }
  0x62   : > { %v388_v13 = vadd.f32 %v387_v11, %v386_v10 }
  0x64   : > { %v389_v14 = vadd.f32 %v388_v13, %v287_v12 }
  0x66   : > { %390 = vst.msk [vmem:[%s695_s2] sm:$0x1] %vm285_vm2, %v389_v14 }
  0x67 PF: > { %s13_s11 = sadd.s32 1, %s527_s11   ;;  %s696_s9 = smov %s523_s10 }
  0x68   : > { %p10_p6 = scmp.ge.s32.totalorder %s13_s11, 4   ;;  %s697_s10 = smov %s699_s12 }
  0x6a   :  { %12 = sbr.rel (!%p10_p6) target bundleno = 2 (0x2), region = 70 }

// kernel: lsn_later_forward.8
= control target key start
LH: loop header
LB: loop body
LE: loop exit
PB: predicated region body
PF: predicated region fallthrough
CT: control target
= control target key end

     0   :  { %s593_s12 = smov 0   ;;  %s595_s13 = smov 0   ;;  %s800_s0 = inlined_call_operand.vmem [shape: f32[512,8], index: 0, kind: input, shape index: {}]   ;;  %s801_s1 = inlined_call_operand.vmem [shape: f32[1,8], index: 1, kind: input, shape index: {}]   ;;  %s802_s2 = inlined_call_operand.vmem [shape: f32[1,8], index: 2, kind: input, shape index: {}]   ;;  %s803_s3 = inlined_call_operand.vmem [shape: f32[512,8], index: 3, kind: output, shape index: {}]  }
   0x1   :  { %s597_s14 = smov 0  }
   0x2 LB: > { %s25_s15 = sadd.s32 1, %s567_s13  ;;  %p516_p0 = scmp.ge.s32.totalorder %s571_s14, 1  ;;  %s571_s14 = sphi %s597_s14, %s13_s14   ;;  %s567_s13 = sphi %s595_s13, %s805_s13   ;;  %s563_s12 = sphi %s593_s12, %s804_s12  }
   0x3   : > { %p27_p1 = scmp.ge.s32.totalorder %s25_s15, 2  ;;  %p173_p2 = scmp.lt.s32.totalorder %s571_s14, 3 }
   0x5   : > { %s807_s15 = smov (%p27_p1, %s25_s15), 0  ;;  %p174_p3 = pnand %p516_p0, %p173_p2 }
   0x6   : > { %s517_s16 = sshll.u32 (!%p174_p3), %s563_s12, 5 }
   0x7   : > { %177 = sbr.rel (%p174_p3) target bundleno = 45 (0x2d), region = 32  ;;  %p210_p4 = scmp.lt.s32.totalorder (!%p174_p3), %s517_s16, 63 }
   0xc   : > { %s809_s16 = smov (!%p210_p4, %s517_s16), 63  ;;  %v614_v0 = vld [vmem:[%s801_s1] ss:$0 sm:$0xff]  ;;  %vm375_vm0 = vcmask 64512  }
   0xd   : > { %s518_s17 = sshll.u32 %s809_s16, 3  ;;  %v624_v1 = vld [vmem:[%s802_s2] ss:$0 sm:$0xff] }
   0xe   : > { %s619_s22 = scalar_lea.vmem %s800_s0, %s518_s17  ;;  %s647_s27 = scalar_lea.vmem %s803_s3, %s518_s17 }
   0xf   : > { %v233_v2 = vld [vmem:[%s619_s22] sm:$0xff]  ;;  %v234_v3 = vld [vmem:[%s619_s22 + $0x8] sm:$0xff]  ;;  %v235_v4 = vld [vmem:[%s619_s22 + $0x10] sm:$0xff] }
  0x10   : > { %v272_v5 = vmul.f32 %v614_v0, %v233_v2  ;;  %v273_v6 = vmul.f32 %v614_v0, %v234_v3  ;;  %v274_v7 = vmul.f32 %v614_v0, %v235_v4  ;;  %v236_v8 = vld [vmem:[%s619_s22 + $0x18] sm:$0xff]  ;;  %v237_v9 = vld [vmem:[%s619_s22 + $0x20] sm:$0xff]  ;;  %v238_v10 = vld [vmem:[%s619_s22 + $0x28] sm:$0xff] }
  0x11   : > { %v275_v11 = vmul.f32 %v614_v0, %v236_v8  ;;  %v276_v12 = vmul.f32 %v614_v0, %v237_v9  ;;  %v277_v13 = vmul.f32 %v614_v0, %v238_v10  ;;  %v239_v14 = vld [vmem:[%s619_s22 + $0x30] sm:$0xff]  ;;  %v240_v15 = vld [vmem:[%s619_s22 + $0x38] sm:$0xff]  ;;  %v241_v24 = vld [vmem:[%s619_s22 + $0x40] sm:$0xff] }
  0x12   : > { %v311_v16 = vadd.f32 %v624_v1, %v272_v5  ;;  %v312_v17 = vadd.f32 %v624_v1, %v273_v6  ;;  %v313_v18 = vadd.f32 %v624_v1, %v274_v7  ;;  %v278_v19 = vmul.f32 %v614_v0, %v239_v14  ;;  %v242_v25 = vld [vmem:[%s619_s22 + $0x48] sm:$0xff]  ;;  %v243_v26 = vld [vmem:[%s619_s22 + $0x50] sm:$0xff]  ;;  %v244_v31 = vld [vmem:[%s619_s22 + $0x58] sm:$0xff] }
  0x13   : > { %v314_v20 = vadd.f32 %v624_v1, %v275_v11  ;;  %v315_v21 = vadd.f32 %v624_v1, %v276_v12  ;;  %v316_v22 = vadd.f32 %v624_v1, %v277_v13  ;;  %v279_v23 = vmul.f32 %v614_v0, %v240_v15  ;;  %v245_v32 = vld [vmem:[%s619_s22 + $0x60] sm:$0xff]  ;;  %v246_v33 = vld [vmem:[%s619_s22 + $0x68] sm:$0xff]  ;;  %v247_v38 = vld [vmem:[%s619_s22 + $0x70] sm:$0xff] }
  0x14   : > { %v343_v27 = vmax.f32 %v311_v16, 0.0  ;;  %v344_v28 = vmax.f32 %v312_v17, 0.0  ;;  %v345_v29 = vmax.f32 %v313_v18, 0.0  ;;  %v317_v30 = vadd.f32 %v624_v1, %v278_v19  ;;  %v248_v43 = vld [vmem:[%s619_s22 + $0x78] sm:$0xff]  ;;  %v249_v56 = vld [vmem:[%s619_s22 + $0x80] sm:$0xff]  ;;  %v250_v57 = vld [vmem:[%s619_s22 + $0x88] sm:$0xff] }
  0x15   : > { %v346_v34 = vmax.f32 %v314_v20, 0.0  ;;  %v347_v35 = vmax.f32 %v315_v21, 0.0  ;;  %v348_v36 = vmax.f32 %v316_v22, 0.0  ;;  %v318_v37 = vadd.f32 %v624_v1, %v279_v23  ;;  %v251_v58 = vld [vmem:[%s619_s22 + $0x90] sm:$0xff]  ;;  %v252_v63 = vld [vmem:[%s619_s22 + $0x98] sm:$0xff]  ;;  %v253_v2 = vld [vmem:[%s619_s22 + $0xa0] sm:$0xff] }
  0x16   : > { %376 = vst.msk [vmem:[%s647_s27] sm:$0xff] %vm375_vm0, %v343_v27  ;;  %377 = vst.msk [vmem:[%s647_s27 + $0x8] sm:$0xff] %vm375_vm0, %v344_v28  ;;  %v349_v39 = vmax.f32 %v317_v30, 0.0  ;;  %v280_v40 = vmul.f32 %v614_v0, %v241_v24  ;;  %v281_v41 = vmul.f32 %v614_v0, %v242_v25  ;;  %v282_v42 = vmul.f32 %v614_v0, %v243_v26  ;;  %v254_v3 = vld [vmem:[%s619_s22 + $0xa8] sm:$0xff]  ;;  %v255_v8 = vld [vmem:[%s619_s22 + $0xb0] sm:$0xff] }
  0x17   : > { %378 = vst.msk [vmem:[%s647_s27 + $0x10] sm:$0xff] %vm375_vm0, %v345_v29  ;;  %379 = vst.msk [vmem:[%s647_s27 + $0x18] sm:$0xff] %vm375_vm0, %v346_v34  ;;  %v350_v44 = vmax.f32 %v318_v37, 0.0  ;;  %v283_v45 = vmul.f32 %v614_v0, %v244_v31  ;;  %v284_v46 = vmul.f32 %v614_v0, %v245_v32  ;;  %v285_v47 = vmul.f32 %v614_v0, %v246_v33  ;;  %v256_v13 = vld [vmem:[%s619_s22 + $0xb8] sm:$0xff]  ;;  %v257_v26 = vld [vmem:[%s619_s22 + $0xc0] sm:$0xff] }
  0x18   : > { %380 = vst.msk [vmem:[%s647_s27 + $0x20] sm:$0xff] %vm375_vm0, %v347_v35  ;;  %381 = vst.msk [vmem:[%s647_s27 + $0x28] sm:$0xff] %vm375_vm0, %v348_v36  ;;  %v319_v48 = vadd.f32 %v624_v1, %v280_v40  ;;  %v320_v49 = vadd.f32 %v624_v1, %v281_v41  ;;  %v321_v50 = vadd.f32 %v624_v1, %v282_v42  ;;  %v258_v27 = vld [vmem:[%s619_s22 + $0xc8] sm:$0xff]  ;;  %v259_v28 = vld [vmem:[%s619_s22 + $0xd0] sm:$0xff] }
  0x19   : > { %382 = vst.msk [vmem:[%s647_s27 + $0x30] sm:$0xff] %vm375_vm0, %v349_v39  ;;  %v286_v51 = vmul.f32 %v614_v0, %v247_v38  ;;  %383 = vst.msk [vmem:[%s647_s27 + $0x38] sm:$0xff] %vm375_vm0, %v350_v44  ;;  %v322_v52 = vadd.f32 %v624_v1, %v283_v45  ;;  %v323_v53 = vadd.f32 %v624_v1, %v284_v46  ;;  %v260_v33 = vld [vmem:[%s619_s22 + $0xd8] sm:$0xff]  ;;  %v261_v34 = vld [vmem:[%s619_s22 + $0xe0] sm:$0xff] }
  0x1a   : > { %v324_v54 = vadd.f32 %v624_v1, %v285_v47  ;;  %v287_v55 = vmul.f32 %v614_v0, %v248_v43  ;;  %v351_v59 = vmax.f32 %v319_v48, 0.0  ;;  %v352_v60 = vmax.f32 %v320_v49, 0.0  ;;  %v262_v35 = vld [vmem:[%s619_s22 + $0xe8] sm:$0xff]  ;;  %v263_v40 = vld [vmem:[%s619_s22 + $0xf0] sm:$0xff]  ;;  %v264_v45 = vld [vmem:[%s619_s22 + $0xf8] sm:$0xff] }
  0x1b   : > { %v353_v61 = vmax.f32 %v321_v50, 0.0  ;;  %v325_v62 = vadd.f32 %v624_v1, %v286_v51  ;;  %v354_v4 = vmax.f32 %v322_v52, 0.0  ;;  %v355_v5 = vmax.f32 %v323_v53, 0.0 }
  0x1c   : > { %v356_v6 = vmax.f32 %v324_v54, 0.0  ;;  %v326_v7 = vadd.f32 %v624_v1, %v287_v55  ;;  %384 = vst.msk [vmem:[%s647_s27 + $0x40] sm:$0xff] %vm375_vm0, %v351_v59  ;;  %385 = vst.msk [vmem:[%s647_s27 + $0x48] sm:$0xff] %vm375_vm0, %v352_v60  ;;  %v288_v10 = vmul.f32 %v614_v0, %v249_v56  ;;  %v289_v11 = vmul.f32 %v614_v0, %v250_v57 }
  0x1d   : > { %386 = vst.msk [vmem:[%s647_s27 + $0x50] sm:$0xff] %vm375_vm0, %v353_v61  ;;  %v357_v9 = vmax.f32 %v325_v62, 0.0  ;;  %v290_v12 = vmul.f32 %v614_v0, %v251_v58  ;;  %387 = vst.msk [vmem:[%s647_s27 + $0x58] sm:$0xff] %vm375_vm0, %v354_v4  ;;  %v291_v15 = vmul.f32 %v614_v0, %v252_v63  ;;  %v292_v16 = vmul.f32 %v614_v0, %v253_v2 }
  0x1e   : > { %388 = vst.msk [vmem:[%s647_s27 + $0x60] sm:$0xff] %vm375_vm0, %v355_v5  ;;  %389 = vst.msk [vmem:[%s647_s27 + $0x68] sm:$0xff] %vm375_vm0, %v356_v6  ;;  %v358_v14 = vmax.f32 %v326_v7, 0.0  ;;  %v293_v17 = vmul.f32 %v614_v0, %v254_v3  ;;  %v327_v18 = vadd.f32 %v624_v1, %v288_v10  ;;  %v328_v19 = vadd.f32 %v624_v1, %v289_v11 }
  0x1f   : > { %390 = vst.msk [vmem:[%s647_s27 + $0x70] sm:$0xff] %vm375_vm0, %v357_v9  ;;  %v329_v20 = vadd.f32 %v624_v1, %v290_v12  ;;  %v294_v21 = vmul.f32 %v614_v0, %v255_v8  ;;  %v330_v22 = vadd.f32 %v624_v1, %v291_v15  ;;  %v331_v23 = vadd.f32 %v624_v1, %v292_v16 }
  0x20   : > { %391 = vst.msk [vmem:[%s647_s27 + $0x78] sm:$0xff] %vm375_vm0, %v358_v14  ;;  %v332_v24 = vadd.f32 %v624_v1, %v293_v17  ;;  %v295_v25 = vmul.f32 %v614_v0, %v256_v13  ;;  %v359_v29 = vmax.f32 %v327_v18, 0.0  ;;  %v360_v30 = vmax.f32 %v328_v19, 0.0 }
  0x21   : > { %v361_v31 = vmax.f32 %v329_v20, 0.0  ;;  %v333_v32 = vadd.f32 %v624_v1, %v294_v21  ;;  %v362_v36 = vmax.f32 %v330_v22, 0.0  ;;  %v363_v37 = vmax.f32 %v331_v23, 0.0 }
  0x22   : > { %v364_v38 = vmax.f32 %v332_v24, 0.0  ;;  %v334_v39 = vadd.f32 %v624_v1, %v295_v25  ;;  %392 = vst.msk [vmem:[%s647_s27 + $0x80] sm:$0xff] %vm375_vm0, %v359_v29  ;;  %393 = vst.msk [vmem:[%s647_s27 + $0x88] sm:$0xff] %vm375_vm0, %v360_v30  ;;  %v296_v42 = vmul.f32 %v614_v0, %v257_v26  ;;  %v297_v43 = vmul.f32 %v614_v0, %v258_v27 }
  0x23   : > { %394 = vst.msk [vmem:[%s647_s27 + $0x90] sm:$0xff] %vm375_vm0, %v361_v31  ;;  %v365_v41 = vmax.f32 %v333_v32, 0.0  ;;  %v298_v44 = vmul.f32 %v614_v0, %v259_v28  ;;  %395 = vst.msk [vmem:[%s647_s27 + $0x98] sm:$0xff] %vm375_vm0, %v362_v36  ;;  %v299_v47 = vmul.f32 %v614_v0, %v260_v33  ;;  %v300_v48 = vmul.f32 %v614_v0, %v261_v34 }
  0x24   : > { %396 = vst.msk [vmem:[%s647_s27 + $0xa0] sm:$0xff] %vm375_vm0, %v363_v37  ;;  %397 = vst.msk [vmem:[%s647_s27 + $0xa8] sm:$0xff] %vm375_vm0, %v364_v38  ;;  %v366_v46 = vmax.f32 %v334_v39, 0.0  ;;  %v301_v49 = vmul.f32 %v614_v0, %v262_v35  ;;  %v335_v50 = vadd.f32 %v624_v1, %v296_v42  ;;  %v336_v51 = vadd.f32 %v624_v1, %v297_v43 }
  0x25   : > { %398 = vst.msk [vmem:[%s647_s27 + $0xb0] sm:$0xff] %vm375_vm0, %v365_v41  ;;  %v337_v52 = vadd.f32 %v624_v1, %v298_v44  ;;  %v302_v53 = vmul.f32 %v614_v0, %v263_v40  ;;  %v338_v54 = vadd.f32 %v624_v1, %v299_v47  ;;  %v339_v55 = vadd.f32 %v624_v1, %v300_v48 }
  0x26   : > { %399 = vst.msk [vmem:[%s647_s27 + $0xb8] sm:$0xff] %vm375_vm0, %v366_v46  ;;  %v340_v56 = vadd.f32 %v624_v1, %v301_v49  ;;  %v303_v57 = vmul.f32 %v614_v0, %v264_v45  ;;  %v367_v58 = vmax.f32 %v335_v50, 0.0  ;;  %v368_v59 = vmax.f32 %v336_v51, 0.0 }
  0x27   : > { %v369_v60 = vmax.f32 %v337_v52, 0.0  ;;  %v341_v61 = vadd.f32 %v624_v1, %v302_v53  ;;  %v370_v62 = vmax.f32 %v338_v54, 0.0  ;;  %v371_v63 = vmax.f32 %v339_v55, 0.0 }
  0x28   : > { %v372_v2 = vmax.f32 %v340_v56, 0.0  ;;  %v342_v3 = vadd.f32 %v624_v1, %v303_v57  ;;  %400 = vst.msk [vmem:[%s647_s27 + $0xc0] sm:$0xff] %vm375_vm0, %v367_v58  ;;  %401 = vst.msk [vmem:[%s647_s27 + $0xc8] sm:$0xff] %vm375_vm0, %v368_v59 }
  0x29   : > { %402 = vst.msk [vmem:[%s647_s27 + $0xd0] sm:$0xff] %vm375_vm0, %v369_v60  ;;  %v373_v4 = vmax.f32 %v341_v61, 0.0  ;;  %403 = vst.msk [vmem:[%s647_s27 + $0xd8] sm:$0xff] %vm375_vm0, %v370_v62 }
  0x2a   : > { %404 = vst.msk [vmem:[%s647_s27 + $0xe0] sm:$0xff] %vm375_vm0, %v371_v63  ;;  %405 = vst.msk [vmem:[%s647_s27 + $0xe8] sm:$0xff] %vm375_vm0, %v372_v2  ;;  %v374_v0 = vmax.f32 %v342_v3, 0.0 }
  0x2b   : > { %406 = vst.msk [vmem:[%s647_s27 + $0xf0] sm:$0xff] %vm375_vm0, %v373_v4 }
  0x2c   : > { %407 = vst.msk [vmem:[%s647_s27 + $0xf8] sm:$0xff] %vm375_vm0, %v374_v0 }
  0x2d PF: > { %s13_s14 = sadd.s32 1, %s571_s14   ;;  %s804_s12 = smov %s567_s13 }
  0x2e   : > { %p10_p5 = scmp.ge.s32.totalorder %s13_s14, 4   ;;  %s805_s13 = smov %s807_s15 }
  0x30   :  { %12 = sbr.rel (!%p10_p5) target bundleno = 2 (0x2), region = 68 }

// kernel: lsn_later_forward.6
= control target key start
LH: loop header
LB: loop body
LE: loop exit
PB: predicated region body
PF: predicated region fallthrough
CT: control target
= control target key end

     0   :  { %s1096_s9 = smov 0   ;;  %s1098_s10 = smov 0   ;;  %s1360_s0 = inlined_call_operand.vmem [shape: f32[512,36], index: 0, kind: input, shape index: {}]   ;;  %s1361_s1 = inlined_call_operand.vmem [shape: f32[36,8], index: 1, kind: input, shape index: {}]   ;;  %s1362_s2 = inlined_call_operand.vmem [shape: f32[512,8], index: 2, kind: output, shape index: {}]  }
   0x1   :  { %s1100_s11 = smov 0  }
   0x2 LB: > { %s31_s12 = sadd.s32 1, %s1074_s10  ;;  %p886_p0 = scmp.ge.s32.totalorder %s1078_s11, 1  ;;  %s1078_s11 = sphi %s1100_s11, %s12_s11   ;;  %s1074_s10 = sphi %s1098_s10, %s1365_s10   ;;  %s1070_s9 = sphi %s1096_s9, %s1364_s9  }
   0x3   : > { %p33_p1 = scmp.ge.s32.totalorder %s31_s12, 2  ;;  %p155_p2 = scmp.lt.s32.totalorder %s1078_s11, 3 }
   0x5   : > { %s1367_s12 = smov (%p33_p1, %s31_s12), 0  ;;  %p156_p3 = pnand %p886_p0, %p155_p2 }
   0x6   : > { %s887_s17 = sshll.u32 (!%p156_p3), %s1070_s9, 5 }
   0x7   : > { %159 = sbr.rel (%p156_p3) target bundleno = 259 (0x103), region = 28  ;;  %p1125_p4 = scmp.lt.s32.totalorder (!%p156_p3), %s887_s17, 63 }
   0xc   : > { %v323_v0 = vld [vmem:[%s1361_s1 + $0x20] sm:$0xf]  ;;  %vm421_vm0 = vcmask 1043456   ;;  %v322_v1 = vld [vmem:[%s1361_s1 + $0x18] sm:$0xff]  ;;  %vm222_vm1 = vcmask 64512   ;;  %v321_v2 = vld [vmem:[%s1361_s1 + $0x10] sm:$0xff] }
   0xd   : > { %963 = vmatprep.subr.msk.mxu0 %vm421_vm0, %v323_v0  ;;  %1021 = vmatprep.subr.msk.mxu1 %vm421_vm0, %v323_v0  ;;  %v1080_v3 = vmov 0.0   ;;  %s1369_s17 = smov (!%p1125_p4, %s887_s17), 63  ;;  %v320_v4 = vld [vmem:[%s1361_s1 + $0x8] sm:$0xff]  ;;  %v319_v5 = vld [vmem:[%s1361_s1] sm:$0xff]  ;;  %vm324_vm2 = vcmask 293888  }
   0xe   : > { %964 = vmatpush3.msk.msra.mxu0 %vm421_vm0, %v323_v0  ;;  %1026 = vmatpush3.msk.msra.mxu1 %vm421_vm0, %v323_v0  ;;  %224 = vst.msk [vmem:[#allocation2 + $0x8] sm:$0xff] %vm222_vm1, %v1080_v3  ;;  %223 = vst.msk [vmem:[#allocation2] sm:$0xff] %vm222_vm1, %v1080_v3  ;;  %s888_s23 = sshll.u32 %s1369_s17, 3 }
   0xf   : > { %225 = vst.msk [vmem:[#allocation2 + $0x10] sm:$0xff] %vm222_vm1, %v1080_v3  ;;  %226 = vst.msk [vmem:[#allocation2 + $0x18] sm:$0xff] %vm222_vm1, %v1080_v3  ;;  %965 = vmatprep.subr.mxu0 %v322_v1  ;;  %1022 = vmatprep.subr.mxu1 %v322_v1  ;;  %s1182_s28 = scalar_lea.vmem %s1360_s0, %s888_s23  ;;  %s1259_s3 = scalar_lea.vmem %s1362_s2, %s888_s23 }
  0x10   : > { %227 = vst.msk [vmem:[#allocation2 + $0x20] sm:$0xff] %vm222_vm1, %v1080_v3  ;;  %228 = vst.msk [vmem:[#allocation2 + $0x28] sm:$0xff] %vm222_vm1, %v1080_v3  ;;  %966 = vmatpush3.msra.mxu0 %v322_v1  ;;  %1027 = vmatpush3.msra.mxu1 %v322_v1  ;;  %v287_v6 = vld [vmem:[%s1182_s28] sm:$0xff]  ;;  %v288_v8 = vld [vmem:[%s1182_s28 + $0x8] sm:$0xff] }
  0x11   : > { %229 = vst.msk [vmem:[#allocation2 + $0x30] sm:$0xff] %vm222_vm1, %v1080_v3  ;;  %230 = vst.msk [vmem:[#allocation2 + $0x38] sm:$0xff] %vm222_vm1, %v1080_v3  ;;  %967 = vmatprep.subr.mxu0 %v321_v2  ;;  %1023 = vmatprep.subr.mxu1 %v321_v2  ;;  %v303_v7 = vld [vmem:[%s1182_s28 + $0x80] sm:$0xff]  ;;  %v304_v9 = vld [vmem:[%s1182_s28 + $0x88] sm:$0xff] }
  0x12   : > { %231 = vst.msk [vmem:[#allocation2 + $0x40] sm:$0xff] %vm222_vm1, %v1080_v3  ;;  %232 = vst.msk [vmem:[#allocation2 + $0x48] sm:$0xff] %vm222_vm1, %v1080_v3  ;;  %968 = vmatpush3.msra.mxu0 %v321_v2  ;;  %1028 = vmatpush3.msra.mxu1 %v321_v2  ;;  %v289_v10 = vld [vmem:[%s1182_s28 + $0x10] sm:$0xff]  ;;  %v290_v12 = vld [vmem:[%s1182_s28 + $0x18] sm:$0xff] }
  0x13   : > { %233 = vst.msk [vmem:[#allocation2 + $0x50] sm:$0xff] %vm222_vm1, %v1080_v3  ;;  %234 = vst.msk [vmem:[#allocation2 + $0x58] sm:$0xff] %vm222_vm1, %v1080_v3  ;;  %969 = vmatprep.subr.mxu0 %v320_v4  ;;  %1024 = vmatprep.subr.mxu1 %v320_v4  ;;  %v305_v11 = vld [vmem:[%s1182_s28 + $0x90] sm:$0xff]  ;;  %v306_v13 = vld [vmem:[%s1182_s28 + $0x98] sm:$0xff] }
  0x14   : > { %235 = vst.msk [vmem:[#allocation2 + $0x60] sm:$0xff] %vm222_vm1, %v1080_v3  ;;  %236 = vst.msk [vmem:[#allocation2 + $0x68] sm:$0xff] %vm222_vm1, %v1080_v3  ;;  %970 = vmatpush3.msra.mxu0 %v320_v4  ;;  %1029 = vmatpush3.msra.mxu1 %v320_v4  ;;  %v291_v14 = vld [vmem:[%s1182_s28 + $0x20] sm:$0xff]  ;;  %v292_v16 = vld [vmem:[%s1182_s28 + $0x28] sm:$0xff] }
  0x15   : > { %237 = vst.msk [vmem:[#allocation2 + $0x70] sm:$0xff] %vm222_vm1, %v1080_v3  ;;  %238 = vst.msk [vmem:[#allocation2 + $0x78] sm:$0xff] %vm222_vm1, %v1080_v3  ;;  %971 = vmatprep.subr.mxu0 %v319_v5  ;;  %1025 = vmatprep.subr.mxu1 %v319_v5  ;;  %v307_v15 = vld [vmem:[%s1182_s28 + $0xa0] sm:$0xff]  ;;  %v308_v17 = vld [vmem:[%s1182_s28 + $0xa8] sm:$0xff] }
  0x16   : > { %239 = vst.msk [vmem:[#allocation2 + $0x80] sm:$0xff] %vm222_vm1, %v1080_v3  ;;  %240 = vst.msk [vmem:[#allocation2 + $0x88] sm:$0xff] %vm222_vm1, %v1080_v3  ;;  %972 = vmatpush3.msra.mxu0 %v319_v5  ;;  %1030 = vmatpush3.msra.mxu1 %v319_v5  ;;  %v293_v18 = vld [vmem:[%s1182_s28 + $0x30] sm:$0xff]  ;;  %v294_v20 = vld [vmem:[%s1182_s28 + $0x38] sm:$0xff] }
  0x17   : > { %241 = vst.msk [vmem:[#allocation2 + $0x90] sm:$0xff] %vm222_vm1, %v1080_v3  ;;  %242 = vst.msk [vmem:[#allocation2 + $0x98] sm:$0xff] %vm222_vm1, %v1080_v3  ;;  %973 = vmatprep.mubr.msk.f32.mxu0 %vm324_vm2, %v287_v6  ;;  %997 = vmatprep.mubr.msk.f32.mxu1 %vm324_vm2, %v303_v7  ;;  %v309_v19 = vld [vmem:[%s1182_s28 + $0xb0] sm:$0xff]  ;;  %v310_v21 = vld [vmem:[%s1182_s28 + $0xb8] sm:$0xff] }
  0x18   : > { %243 = vst.msk [vmem:[#allocation2 + $0xa0] sm:$0xff] %vm222_vm1, %v1080_v3  ;;  %244 = vst.msk [vmem:[#allocation2 + $0xa8] sm:$0xff] %vm222_vm1, %v1080_v3  ;;  %974 = vmatmul.mubr.msk.f32.vlgmr.msra.gmra.mxu0 %vm324_vm2, %v288_v8  ;;  %998 = vmatmul.mubr.msk.f32.vlgmr.msra.gmra.mxu1 %vm324_vm2, %v304_v9  ;;  %v295_v22 = vld [vmem:[%s1182_s28 + $0x40] sm:$0xff]  ;;  %v296_v24 = vld [vmem:[%s1182_s28 + $0x48] sm:$0xff] }
  0x19   : > { %245 = vst.msk [vmem:[#allocation2 + $0xb0] sm:$0xff] %vm222_vm1, %v1080_v3  ;;  %246 = vst.msk [vmem:[#allocation2 + $0xb8] sm:$0xff] %vm222_vm1, %v1080_v3  ;;  %976 = vmatprep.mubr.msk.f32.mxu0 %vm324_vm2, %v289_v10  ;;  %1000 = vmatprep.mubr.msk.f32.mxu1 %vm324_vm2, %v305_v11  ;;  %v311_v23 = vld [vmem:[%s1182_s28 + $0xc0] sm:$0xff]  ;;  %v312_v25 = vld [vmem:[%s1182_s28 + $0xc8] sm:$0xff] }
  0x1a   : > { %247 = vst.msk [vmem:[#allocation2 + $0xc0] sm:$0xff] %vm222_vm1, %v1080_v3  ;;  %248 = vst.msk [vmem:[#allocation2 + $0xc8] sm:$0xff] %vm222_vm1, %v1080_v3  ;;  %v297_v26 = vld [vmem:[%s1182_s28 + $0x50] sm:$0xff]  ;;  %v298_v28 = vld [vmem:[%s1182_s28 + $0x58] sm:$0xff] }
  0x1b   : > { %249 = vst.msk [vmem:[#allocation2 + $0xd0] sm:$0xff] %vm222_vm1, %v1080_v3  ;;  %250 = vst.msk [vmem:[#allocation2 + $0xd8] sm:$0xff] %vm222_vm1, %v1080_v3  ;;  %v313_v27 = vld [vmem:[%s1182_s28 + $0xd0] sm:$0xff]  ;;  %v314_v29 = vld [vmem:[%s1182_s28 + $0xd8] sm:$0xff] }
  0x1c   : > { %251 = vst.msk [vmem:[#allocation2 + $0xe0] sm:$0xff] %vm222_vm1, %v1080_v3  ;;  %252 = vst.msk [vmem:[#allocation2 + $0xe8] sm:$0xff] %vm222_vm1, %v1080_v3  ;;  %977 = vmatmul.mubr.msk.f32.gmra.mxu0 %vm324_vm2, %v290_v12  ;;  %1001 = vmatmul.mubr.msk.f32.gmra.mxu1 %vm324_vm2, %v306_v13  ;;  %v299_v30 = vld [vmem:[%s1182_s28 + $0x60] sm:$0xff]  ;;  %v300_v32 = vld [vmem:[%s1182_s28 + $0x68] sm:$0xff] }
  0x1d   : > { %253 = vst.msk [vmem:[#allocation2 + $0xf0] sm:$0xff] %vm222_vm1, %v1080_v3  ;;  %254 = vst.msk [vmem:[#allocation2 + $0xf8] sm:$0xff] %vm222_vm1, %v1080_v3  ;;  %979 = vmatprep.mubr.msk.f32.mxu0 %vm324_vm2, %v291_v14  ;;  %1003 = vmatprep.mubr.msk.f32.mxu1 %vm324_vm2, %v307_v15  ;;  %v315_v31 = vld [vmem:[%s1182_s28 + $0xe0] sm:$0xff]  ;;  %v316_v33 = vld [vmem:[%s1182_s28 + $0xe8] sm:$0xff] }
  0x1e   : > { %v301_v34 = vld [vmem:[%s1182_s28 + $0x70] sm:$0xff]  ;;  %v302_v36 = vld [vmem:[%s1182_s28 + $0x78] sm:$0xff]  ;;  %v256_v38 = vld [vmem:[#allocation2 + $0x8] sm:$0xff] }
  0x1f   : > { %v317_v35 = vld [vmem:[%s1182_s28 + $0xf0] sm:$0xff]  ;;  %v318_v37 = vld [vmem:[%s1182_s28 + $0xf8] sm:$0xff]  ;;  %v272_v39 = vld [vmem:[#allocation2 + $0x88] sm:$0xff] }
  0x20   : > { %980 = vmatmul.mubr.msk.f32.gmra.mxu0 %vm324_vm2, %v292_v16  ;;  %1004 = vmatmul.mubr.msk.f32.gmra.mxu1 %vm324_vm2, %v308_v17  ;;  %v255_v42 = vld [vmem:[#allocation2] sm:$0xff]  ;;  %v258_v48 = vld [vmem:[#allocation2 + $0x18] sm:$0xff]  ;;  %v257_v54 = vld [vmem:[#allocation2 + $0x10] sm:$0xff] }
  0x21   : > { %982 = vmatprep.mubr.msk.f32.mxu0 %vm324_vm2, %v293_v18  ;;  %1006 = vmatprep.mubr.msk.f32.mxu1 %vm324_vm2, %v309_v19  ;;  %v271_v43 = vld [vmem:[#allocation2 + $0x80] sm:$0xff]  ;;  %v274_v49 = vld [vmem:[#allocation2 + $0x98] sm:$0xff]  ;;  %v273_v55 = vld [vmem:[#allocation2 + $0x90] sm:$0xff] }
  0x22   : > { %v260_v60 = vld [vmem:[#allocation2 + $0x28] sm:$0xff]  ;;  %v259_v2 = vld [vmem:[#allocation2 + $0x20] sm:$0xff]  ;;  %v262_v6 = vld [vmem:[#allocation2 + $0x38] sm:$0xff] }
  0x23   : > { %v276_v61 = vld [vmem:[#allocation2 + $0xa8] sm:$0xff]  ;;  %v275_v3 = vld [vmem:[#allocation2 + $0xa0] sm:$0xff]  ;;  %v278_v11 = vld [vmem:[#allocation2 + $0xb8] sm:$0xff] }
  0x24   : > { %983 = vmatmul.mubr.msk.f32.gmra.mxu0 %vm324_vm2, %v294_v20  ;;  %1007 = vmatmul.mubr.msk.f32.gmra.mxu1 %vm324_vm2, %v310_v21  ;;  %v261_v14 = vld [vmem:[#allocation2 + $0x30] sm:$0xff] }
  0x25   : > { %985 = vmatprep.mubr.msk.f32.mxu0 %vm324_vm2, %v295_v22  ;;  %1009 = vmatprep.mubr.msk.f32.mxu1 %vm324_vm2, %v311_v23  ;;  %v277_v19 = vld [vmem:[#allocation2 + $0xb0] sm:$0xff]  ;;  %v264_v22 = vld [vmem:[#allocation2 + $0x48] sm:$0xff] }
  0x28   : > { %986 = vmatmul.mubr.msk.f32.gmra.mxu0 %vm324_vm2, %v296_v24  ;;  %1010 = vmatmul.mubr.msk.f32.gmra.mxu1 %vm324_vm2, %v312_v25 }
  0x29   : > { %988 = vmatprep.mubr.msk.f32.mxu0 %vm324_vm2, %v297_v26  ;;  %1012 = vmatprep.mubr.msk.f32.mxu1 %vm324_vm2, %v313_v27  ;;  %v280_v27 = vld [vmem:[#allocation2 + $0xc8] sm:$0xff] }
  0x2c   : > { %989 = vmatmul.mubr.msk.f32.gmra.mxu0 %vm324_vm2, %v298_v28  ;;  %1013 = vmatmul.mubr.msk.f32.gmra.mxu1 %vm324_vm2, %v314_v29 }
  0x2d   : > { %991 = vmatprep.mubr.msk.f32.mxu0 %vm324_vm2, %v299_v30  ;;  %1015 = vmatprep.mubr.msk.f32.mxu1 %vm324_vm2, %v315_v31  ;;  %v263_v30 = vld [vmem:[#allocation2 + $0x40] sm:$0xff] }
  0x30   : > { %992 = vmatmul.mubr.msk.f32.gmra.mxu0 %vm324_vm2, %v300_v32  ;;  %1016 = vmatmul.mubr.msk.f32.gmra.mxu1 %vm324_vm2, %v316_v33 }
  0x31   : > { %994 = vmatprep.mubr.msk.f32.mxu0 %vm324_vm2, %v301_v34  ;;  %1018 = vmatprep.mubr.msk.f32.mxu1 %vm324_vm2, %v317_v35  ;;  %v279_v35 = vld [vmem:[#allocation2 + $0xc0] sm:$0xff] }
  0x34   : > { %995 = vmatmul.mubr.msk.f32.gmra.mxu0 %vm324_vm2, %v302_v36  ;;  %1019 = vmatmul.mubr.msk.f32.gmra.mxu1 %vm324_vm2, %v318_v37 }
  0xd8   : > { %v975_v40 = vpop.f32.mrf.mxu0  ;;  %v999_v41 = vpop.f32.mrf.mxu1 }
  0xd9   : > { %v651_v44 = vadd.f32 %v975_v40, %v256_v38  ;;  %v667_v45 = vadd.f32 %v999_v41, %v272_v39  ;;  %v266_v38 = vld [vmem:[#allocation2 + $0x58] sm:$0xff] }
  0xda   : > { %v491_v46 = vpop.f32.mrf.mxu0  ;;  %v571_v47 = vpop.f32.mrf.mxu1 }
  0xdb   : > { %684 = vst.msk [vmem:[#allocation2 + $0x8] sm:$0xff] %vm222_vm1, %v651_v44  ;;  %700 = vst.msk [vmem:[#allocation2 + $0x88] sm:$0xff] %vm222_vm1, %v667_v45  ;;  %v650_v50 = vadd.f32 %v491_v46, %v255_v42  ;;  %v666_v51 = vadd.f32 %v571_v47, %v271_v43  ;;  %v282_v43 = vld [vmem:[#allocation2 + $0xd8] sm:$0xff]  ;;  %v265_v46 = vld [vmem:[#allocation2 + $0x50] sm:$0xff] }
  0xdc   : > { %v978_v52 = vpop.f32.mrf.mxu0  ;;  %v1002_v53 = vpop.f32.mrf.mxu1 }
  0xdd   : > { %683 = vst.msk [vmem:[#allocation2] sm:$0xff] %vm222_vm1, %v650_v50  ;;  %699 = vst.msk [vmem:[#allocation2 + $0x80] sm:$0xff] %vm222_vm1, %v666_v51  ;;  %v653_v56 = vadd.f32 %v978_v52, %v258_v48  ;;  %v669_v57 = vadd.f32 %v1002_v53, %v274_v49  ;;  %v281_v51 = vld [vmem:[#allocation2 + $0xd0] sm:$0xff] }
  0xde   : > { %v501_v58 = vpop.f32.mrf.mxu0  ;;  %v581_v59 = vpop.f32.mrf.mxu1 }
  0xdf   : > { %686 = vst.msk [vmem:[#allocation2 + $0x18] sm:$0xff] %vm222_vm1, %v653_v56  ;;  %702 = vst.msk [vmem:[#allocation2 + $0x98] sm:$0xff] %vm222_vm1, %v669_v57  ;;  %v652_v62 = vadd.f32 %v501_v58, %v257_v54  ;;  %v668_v63 = vadd.f32 %v581_v59, %v273_v55  ;;  %v268_v54 = vld [vmem:[#allocation2 + $0x68] sm:$0xff] }
  0xe0   : > { %v981_v0 = vpop.f32.mrf.mxu0  ;;  %v1005_v1 = vpop.f32.mrf.mxu1  ;;  %v284_v59 = vld [vmem:[#allocation2 + $0xe8] sm:$0xff] }
  0xe1   : > { %685 = vst.msk [vmem:[#allocation2 + $0x10] sm:$0xff] %vm222_vm1, %v652_v62  ;;  %701 = vst.msk [vmem:[#allocation2 + $0x90] sm:$0xff] %vm222_vm1, %v668_v63  ;;  %v655_v4 = vadd.f32 %v981_v0, %v260_v60  ;;  %v671_v5 = vadd.f32 %v1005_v1, %v276_v61  ;;  %v267_v62 = vld [vmem:[#allocation2 + $0x60] sm:$0xff] }
  0xe2   : > { %v719_v7 = vld [vmem:[#allocation2 + $0x8] sm:$0xff]  ;;  %v511_v9 = vpop.f32.mrf.mxu0  ;;  %v591_v10 = vpop.f32.mrf.mxu1 }
  0xe3   : > { %v735_v8 = vld [vmem:[#allocation2 + $0x88] sm:$0xff]  ;;  %751 = vst.msk [vmem:[%s1259_s3 + $0x8] sm:$0xff] %vm222_vm1, %v719_v7  ;;  %688 = vst.msk [vmem:[#allocation2 + $0x28] sm:$0xff] %vm222_vm1, %v655_v4  ;;  %v654_v12 = vadd.f32 %v511_v9, %v259_v2  ;;  %v670_v13 = vadd.f32 %v591_v10, %v275_v3  ;;  %v283_v3 = vld [vmem:[#allocation2 + $0xe0] sm:$0xff] }
  0xe4   : > { %767 = vst.msk [vmem:[%s1259_s3 + $0x88] sm:$0xff] %vm222_vm1, %v735_v8  ;;  %704 = vst.msk [vmem:[#allocation2 + $0xa8] sm:$0xff] %vm222_vm1, %v671_v5  ;;  %v718_v15 = vld [vmem:[#allocation2] sm:$0xff]  ;;  %v984_v17 = vpop.f32.mrf.mxu0  ;;  %v1008_v18 = vpop.f32.mrf.mxu1 }
  0xe5   : > { %v734_v16 = vld [vmem:[#allocation2 + $0x80] sm:$0xff]  ;;  %750 = vst.msk [vmem:[%s1259_s3] sm:$0xff] %vm222_vm1, %v718_v15  ;;  %687 = vst.msk [vmem:[#allocation2 + $0x20] sm:$0xff] %vm222_vm1, %v654_v12  ;;  %v657_v20 = vadd.f32 %v984_v17, %v262_v6  ;;  %v673_v21 = vadd.f32 %v1008_v18, %v278_v11  ;;  %v270_v6 = vld [vmem:[#allocation2 + $0x78] sm:$0xff] }
  0xe6   : > { %766 = vst.msk [vmem:[%s1259_s3 + $0x80] sm:$0xff] %vm222_vm1, %v734_v16  ;;  %703 = vst.msk [vmem:[#allocation2 + $0xa0] sm:$0xff] %vm222_vm1, %v670_v13  ;;  %v721_v23 = vld [vmem:[#allocation2 + $0x18] sm:$0xff]  ;;  %v521_v25 = vpop.f32.mrf.mxu0  ;;  %v601_v26 = vpop.f32.mrf.mxu1 }
  0xe7   : > { %v737_v24 = vld [vmem:[#allocation2 + $0x98] sm:$0xff]  ;;  %753 = vst.msk [vmem:[%s1259_s3 + $0x18] sm:$0xff] %vm222_vm1, %v721_v23  ;;  %690 = vst.msk [vmem:[#allocation2 + $0x38] sm:$0xff] %vm222_vm1, %v657_v20  ;;  %v656_v28 = vadd.f32 %v521_v25, %v261_v14  ;;  %v672_v29 = vadd.f32 %v601_v26, %v277_v19  ;;  %v269_v14 = vld [vmem:[#allocation2 + $0x70] sm:$0xff] }
  0xe8   : > { %769 = vst.msk [vmem:[%s1259_s3 + $0x98] sm:$0xff] %vm222_vm1, %v737_v24  ;;  %706 = vst.msk [vmem:[#allocation2 + $0xb8] sm:$0xff] %vm222_vm1, %v673_v21  ;;  %v720_v31 = vld [vmem:[#allocation2 + $0x10] sm:$0xff]  ;;  %v987_v33 = vpop.f32.mrf.mxu0  ;;  %v1011_v34 = vpop.f32.mrf.mxu1  ;;  %v286_v11 = vld [vmem:[#allocation2 + $0xf8] sm:$0xff] }
  0xe9   : > { %v736_v32 = vld [vmem:[#allocation2 + $0x90] sm:$0xff]  ;;  %752 = vst.msk [vmem:[%s1259_s3 + $0x10] sm:$0xff] %vm222_vm1, %v720_v31  ;;  %689 = vst.msk [vmem:[#allocation2 + $0x30] sm:$0xff] %vm222_vm1, %v656_v28  ;;  %v659_v36 = vadd.f32 %v987_v33, %v264_v22  ;;  %v675_v37 = vadd.f32 %v1011_v34, %v280_v27 }
  0xea   : > { %768 = vst.msk [vmem:[%s1259_s3 + $0x90] sm:$0xff] %vm222_vm1, %v736_v32  ;;  %705 = vst.msk [vmem:[#allocation2 + $0xb0] sm:$0xff] %vm222_vm1, %v672_v29  ;;  %v723_v39 = vld [vmem:[#allocation2 + $0x28] sm:$0xff]  ;;  %v531_v41 = vpop.f32.mrf.mxu0  ;;  %v611_v42 = vpop.f32.mrf.mxu1  ;;  %v285_v19 = vld [vmem:[#allocation2 + $0xf0] sm:$0xff] }
  0xeb   : > { %v739_v40 = vld [vmem:[#allocation2 + $0xa8] sm:$0xff]  ;;  %755 = vst.msk [vmem:[%s1259_s3 + $0x28] sm:$0xff] %vm222_vm1, %v723_v39  ;;  %692 = vst.msk [vmem:[#allocation2 + $0x48] sm:$0xff] %vm222_vm1, %v659_v36  ;;  %v658_v44 = vadd.f32 %v531_v41, %v263_v30  ;;  %v674_v45 = vadd.f32 %v611_v42, %v279_v35 }
  0xec   : > { %771 = vst.msk [vmem:[%s1259_s3 + $0xa8] sm:$0xff] %vm222_vm1, %v739_v40  ;;  %708 = vst.msk [vmem:[#allocation2 + $0xc8] sm:$0xff] %vm222_vm1, %v675_v37  ;;  %v722_v47 = vld [vmem:[#allocation2 + $0x20] sm:$0xff]  ;;  %v990_v49 = vpop.f32.mrf.mxu0  ;;  %v1014_v50 = vpop.f32.mrf.mxu1 }
  0xed   : > { %v738_v48 = vld [vmem:[#allocation2 + $0xa0] sm:$0xff]  ;;  %754 = vst.msk [vmem:[%s1259_s3 + $0x20] sm:$0xff] %vm222_vm1, %v722_v47  ;;  %691 = vst.msk [vmem:[#allocation2 + $0x40] sm:$0xff] %vm222_vm1, %v658_v44  ;;  %v661_v52 = vadd.f32 %v990_v49, %v266_v38  ;;  %v677_v53 = vadd.f32 %v1014_v50, %v282_v43 }
  0xee   : > { %770 = vst.msk [vmem:[%s1259_s3 + $0xa0] sm:$0xff] %vm222_vm1, %v738_v48  ;;  %707 = vst.msk [vmem:[#allocation2 + $0xc0] sm:$0xff] %vm222_vm1, %v674_v45  ;;  %v725_v55 = vld [vmem:[#allocation2 + $0x38] sm:$0xff]  ;;  %v541_v57 = vpop.f32.mrf.mxu0  ;;  %v621_v58 = vpop.f32.mrf.mxu1 }
  0xef   : > { %v741_v56 = vld [vmem:[#allocation2 + $0xb8] sm:$0xff]  ;;  %757 = vst.msk [vmem:[%s1259_s3 + $0x38] sm:$0xff] %vm222_vm1, %v725_v55  ;;  %694 = vst.msk [vmem:[#allocation2 + $0x58] sm:$0xff] %vm222_vm1, %v661_v52  ;;  %v660_v60 = vadd.f32 %v541_v57, %v265_v46  ;;  %v676_v61 = vadd.f32 %v621_v58, %v281_v51 }
  0xf0   : > { %773 = vst.msk [vmem:[%s1259_s3 + $0xb8] sm:$0xff] %vm222_vm1, %v741_v56  ;;  %710 = vst.msk [vmem:[#allocation2 + $0xd8] sm:$0xff] %vm222_vm1, %v677_v53  ;;  %v724_v63 = vld [vmem:[#allocation2 + $0x30] sm:$0xff]  ;;  %v993_v1 = vpop.f32.mrf.mxu0  ;;  %v1017_v2 = vpop.f32.mrf.mxu1 }
  0xf1   : > { %v740_v0 = vld [vmem:[#allocation2 + $0xb0] sm:$0xff]  ;;  %756 = vst.msk [vmem:[%s1259_s3 + $0x30] sm:$0xff] %vm222_vm1, %v724_v63  ;;  %693 = vst.msk [vmem:[#allocation2 + $0x50] sm:$0xff] %vm222_vm1, %v660_v60  ;;  %v663_v4 = vadd.f32 %v993_v1, %v268_v54  ;;  %v679_v5 = vadd.f32 %v1017_v2, %v284_v59 }
  0xf2   : > { %772 = vst.msk [vmem:[%s1259_s3 + $0xb0] sm:$0xff] %vm222_vm1, %v740_v0  ;;  %709 = vst.msk [vmem:[#allocation2 + $0xd0] sm:$0xff] %vm222_vm1, %v676_v61  ;;  %v727_v7 = vld [vmem:[#allocation2 + $0x48] sm:$0xff]  ;;  %v551_v9 = vpop.f32.mrf.mxu0  ;;  %v631_v10 = vpop.f32.mrf.mxu1 }
  0xf3   : > { %v743_v8 = vld [vmem:[#allocation2 + $0xc8] sm:$0xff]  ;;  %759 = vst.msk [vmem:[%s1259_s3 + $0x48] sm:$0xff] %vm222_vm1, %v727_v7  ;;  %696 = vst.msk [vmem:[#allocation2 + $0x68] sm:$0xff] %vm222_vm1, %v663_v4  ;;  %v662_v12 = vadd.f32 %v551_v9, %v267_v62  ;;  %v678_v13 = vadd.f32 %v631_v10, %v283_v3 }
  0xf4   : > { %775 = vst.msk [vmem:[%s1259_s3 + $0xc8] sm:$0xff] %vm222_vm1, %v743_v8  ;;  %712 = vst.msk [vmem:[#allocation2 + $0xe8] sm:$0xff] %vm222_vm1, %v679_v5  ;;  %v726_v15 = vld [vmem:[#allocation2 + $0x40] sm:$0xff]  ;;  %v996_v17 = vpop.f32.mrf.mxu0  ;;  %v1020_v18 = vpop.f32.mrf.mxu1 }
  0xf5   : > { %v742_v16 = vld [vmem:[#allocation2 + $0xc0] sm:$0xff]  ;;  %758 = vst.msk [vmem:[%s1259_s3 + $0x40] sm:$0xff] %vm222_vm1, %v726_v15  ;;  %695 = vst.msk [vmem:[#allocation2 + $0x60] sm:$0xff] %vm222_vm1, %v662_v12  ;;  %v665_v20 = vadd.f32 %v996_v17, %v270_v6  ;;  %v681_v21 = vadd.f32 %v1020_v18, %v286_v11 }
  0xf6   : > { %774 = vst.msk [vmem:[%s1259_s3 + $0xc0] sm:$0xff] %vm222_vm1, %v742_v16  ;;  %711 = vst.msk [vmem:[#allocation2 + $0xe0] sm:$0xff] %vm222_vm1, %v678_v13  ;;  %v729_v22 = vld [vmem:[#allocation2 + $0x58] sm:$0xff]  ;;  %v561_v24 = vpop.f32.mrf.mxu0  ;;  %v641_v25 = vpop.f32.mrf.mxu1 }
  0xf7   : > { %v745_v23 = vld [vmem:[#allocation2 + $0xd8] sm:$0xff]  ;;  %761 = vst.msk [vmem:[%s1259_s3 + $0x58] sm:$0xff] %vm222_vm1, %v729_v22  ;;  %698 = vst.msk [vmem:[#allocation2 + $0x78] sm:$0xff] %vm222_vm1, %v665_v20  ;;  %v664_v26 = vadd.f32 %v561_v24, %v269_v14  ;;  %v680_v27 = vadd.f32 %v641_v25, %v285_v19 }
  0xf8   : > { %777 = vst.msk [vmem:[%s1259_s3 + $0xd8] sm:$0xff] %vm222_vm1, %v745_v23  ;;  %714 = vst.msk [vmem:[#allocation2 + $0xf8] sm:$0xff] %vm222_vm1, %v681_v21  ;;  %v728_v28 = vld [vmem:[#allocation2 + $0x50] sm:$0xff] }
  0xf9   : > { %v744_v29 = vld [vmem:[#allocation2 + $0xd0] sm:$0xff]  ;;  %760 = vst.msk [vmem:[%s1259_s3 + $0x50] sm:$0xff] %vm222_vm1, %v728_v28  ;;  %697 = vst.msk [vmem:[#allocation2 + $0x70] sm:$0xff] %vm222_vm1, %v664_v26 }
  0xfa   : > { %776 = vst.msk [vmem:[%s1259_s3 + $0xd0] sm:$0xff] %vm222_vm1, %v744_v29  ;;  %713 = vst.msk [vmem:[#allocation2 + $0xf0] sm:$0xff] %vm222_vm1, %v680_v27  ;;  %v731_v30 = vld [vmem:[#allocation2 + $0x68] sm:$0xff] }
  0xfb   : > { %v747_v31 = vld [vmem:[#allocation2 + $0xe8] sm:$0xff]  ;;  %763 = vst.msk [vmem:[%s1259_s3 + $0x68] sm:$0xff] %vm222_vm1, %v731_v30 }
  0xfc   : > { %779 = vst.msk [vmem:[%s1259_s3 + $0xe8] sm:$0xff] %vm222_vm1, %v747_v31  ;;  %v730_v32 = vld [vmem:[#allocation2 + $0x60] sm:$0xff] }
  0xfd   : > { %v746_v33 = vld [vmem:[#allocation2 + $0xe0] sm:$0xff]  ;;  %762 = vst.msk [vmem:[%s1259_s3 + $0x60] sm:$0xff] %vm222_vm1, %v730_v32 }
  0xfe   : > { %778 = vst.msk [vmem:[%s1259_s3 + $0xe0] sm:$0xff] %vm222_vm1, %v746_v33  ;;  %v733_v34 = vld [vmem:[#allocation2 + $0x78] sm:$0xff] }
  0xff   : > { %v749_v35 = vld [vmem:[#allocation2 + $0xf8] sm:$0xff]  ;;  %765 = vst.msk [vmem:[%s1259_s3 + $0x78] sm:$0xff] %vm222_vm1, %v733_v34 }
 0x100   : > { %781 = vst.msk [vmem:[%s1259_s3 + $0xf8] sm:$0xff] %vm222_vm1, %v749_v35  ;;  %v732_v36 = vld [vmem:[#allocation2 + $0x70] sm:$0xff] }
 0x101   : > { %v748_v37 = vld [vmem:[#allocation2 + $0xf0] sm:$0xff]  ;;  %764 = vst.msk [vmem:[%s1259_s3 + $0x70] sm:$0xff] %vm222_vm1, %v732_v36 }
 0x102   : > { %780 = vst.msk [vmem:[%s1259_s3 + $0xf0] sm:$0xff] %vm222_vm1, %v748_v37 }
 0x103 PF: > { %s12_s11 = sadd.s32 1, %s1078_s11   ;;  %s1364_s9 = smov %s1074_s10 }
 0x104   : > { %p9_p5 = scmp.ge.s32.totalorder %s12_s11, 4   ;;  %s1365_s10 = smov %s1367_s12 }
 0x106   :  { %11 = sbr.rel (!%p9_p5) target bundleno = 2 (0x2), region = 69 }

// kernel: lsn_later_forward.10
= control target key start
LH: loop header
LB: loop body
LE: loop exit
PB: predicated region body
PF: predicated region fallthrough
CT: control target
= control target key end

     0   :  { %s545_s9 = smov 0   ;;  %s547_s10 = smov 0   ;;  %s693_s0 = inlined_call_operand.vmem [shape: f32[512,32], index: 0, kind: input, shape index: {}]   ;;  %s694_s1 = inlined_call_operand.vmem [shape: f32[1,32], index: 1, kind: output, shape index: {0}]   ;;  %s695_s2 = inlined_call_operand.vmem [shape: f32[1,32], index: 2, kind: output, shape index: {1}]  }
   0x1   :  { %s549_s11 = smov 0  }
   0x2 LB: > { %s22_s12 = sadd.s32 1, %s523_s10  ;;  %p472_p0 = scmp.ge.s32.totalorder %s527_s11, 1  ;;  %s527_s11 = sphi %s549_s11, %s13_s11   ;;  %s523_s10 = sphi %s547_s10, %s697_s10   ;;  %s519_s9 = sphi %s545_s9, %s696_s9  }
   0x3   : > { %p23_p1 = scmp.ge.s32.totalorder %s22_s12, 2  ;;  %p133_p2 = scmp.lt.s32.totalorder %s527_s11, 3 }
   0x5   : > { %s699_s12 = smov (%p23_p1, %s22_s12), 0  ;;  %p134_p3 = pnand %p472_p0, %p133_p2 }
   0x6   : > { %s473_s13 = sshll.u32 (!%p134_p3), %s519_s9, 5  ;;  %p475_p5 = scmp.ne.s32.totalorder (!%p134_p3), %s519_s9, 0 }
   0x7   : > { %137 = sbr.rel (%p134_p3) target bundleno = 103 (0x67), region = 24  ;;  %p160_p4 = scmp.lt.s32.totalorder (!%p134_p3), %s473_s13, 63 }
   0xc   : > { %s701_s13 = smov (!%p160_p4, %s473_s13), 63  ;;  %177 = sbr.rel (%p475_p5) target bundleno = 19 (0x13), region = 28 }
   0xd   : > { %s474_s14 = sshll.u32 %s701_s13, 3 }
   0xe   : > { %s566_s17 = scalar_lea.vmem %s693_s0, %s474_s14 }
  0x11   : > { %vm178_vm0 = vcmask 253952   ;;  %v529_v0 = vmov 0.0  }
  0x12   : > { %179 = vst.msk [vmem:[%s694_s1] sm:$0x1] %vm178_vm0, %v529_v0  ;;  %180 = vst.msk [vmem:[%s695_s2] sm:$0x1] %vm178_vm0, %v529_v0 }
  0x13 PF: > { %v181_v1 = vld [vmem:[%s566_s17] sm:$0xff]  ;;  %v182_v2 = vld [vmem:[%s566_s17 + $0x8] sm:$0xff]  ;;  %v183_v3 = vld [vmem:[%s566_s17 + $0x10] sm:$0xff]  ;;  %vm214_vm1 = vcmask 261120   ;;  %vm285_vm2 = vcmask 253952  }
  0x14   : > { %v215_v4 = vsel %vm214_vm1, %v181_v1, 0.0  ;;  %v216_v5 = vsel %vm214_vm1, %v182_v2, 0.0  ;;  %v218_v6 = vsel %vm214_vm1, %v183_v3, 0.0  ;;  %v184_v7 = vld [vmem:[%s566_s17 + $0x18] sm:$0xff]  ;;  %v185_v10 = vld [vmem:[%s566_s17 + $0x20] sm:$0xff]  ;;  %v186_v13 = vld [vmem:[%s566_s17 + $0x28] sm:$0xff]  ;;  %v288_v28 = vmul.f32 %v181_v1, %v181_v1 }
  0x15   : > { %v217_v8 = vadd.f32 %v216_v5, %v215_v4  ;;  %v220_v9 = vsel %vm214_vm1, %v184_v7, 0.0  ;;  %v222_v12 = vsel %vm214_vm1, %v185_v10, 0.0  ;;  %v224_v15 = vsel %vm214_vm1, %v186_v13, 0.0  ;;  %v187_v16 = vld [vmem:[%s566_s17 + $0x30] sm:$0xff]  ;;  %v188_v19 = vld [vmem:[%s566_s17 + $0x38] sm:$0xff]  ;;  %v189_v22 = vld [vmem:[%s566_s17 + $0x40] sm:$0xff] }
  0x16   : > { %v226_v18 = vsel %vm214_vm1, %v187_v16, 0.0  ;;  %v228_v21 = vsel %vm214_vm1, %v188_v19, 0.0  ;;  %v230_v24 = vsel %vm214_vm1, %v189_v22, 0.0  ;;  %v190_v25 = vld [vmem:[%s566_s17 + $0x48] sm:$0xff]  ;;  %v289_v29 = vmul.f32 %v182_v2, %v182_v2  ;;  %v191_v31 = vld [vmem:[%s566_s17 + $0x50] sm:$0xff]  ;;  %v192_v33 = vld [vmem:[%s566_s17 + $0x58] sm:$0xff] }
  0x17   : > { %v219_v11 = vadd.f32 %v218_v6, %v217_v8  ;;  %v232_v27 = vsel %vm214_vm1, %v190_v25, 0.0  ;;  %v290_v30 = vmul.f32 %v183_v3, %v183_v3  ;;  %v234_v34 = vsel %vm214_vm1, %v191_v31, 0.0  ;;  %v193_v42 = vld [vmem:[%s566_s17 + $0x60] sm:$0xff]  ;;  %v194_v48 = vld [vmem:[%s566_s17 + $0x68] sm:$0xff]  ;;  %v195_v54 = vld [vmem:[%s566_s17 + $0x70] sm:$0xff] }
  0x18   : > { %v291_v35 = vmul.f32 %v184_v7, %v184_v7  ;;  %v236_v37 = vsel %vm214_vm1, %v192_v33, 0.0  ;;  %v292_v38 = vmul.f32 %v185_v10, %v185_v10  ;;  %v320_v39 = vsel %vm214_vm1, %v288_v28, 0.0  ;;  %v196_v60 = vld [vmem:[%s566_s17 + $0x78] sm:$0xff]  ;;  %v197_v2 = vld [vmem:[%s566_s17 + $0x80] sm:$0xff]  ;;  %v198_v8 = vld [vmem:[%s566_s17 + $0x88] sm:$0xff] }
  0x19   : > { %v221_v14 = vadd.f32 %v220_v9, %v219_v11  ;;  %v321_v40 = vsel %vm214_vm1, %v289_v29, 0.0  ;;  %v323_v41 = vsel %vm214_vm1, %v290_v30, 0.0  ;;  %v238_v45 = vsel %vm214_vm1, %v193_v42, 0.0 }
  0x1a   : > { %v322_v44 = vadd.f32 %v321_v40, %v320_v39  ;;  %v293_v46 = vmul.f32 %v186_v13, %v186_v13  ;;  %v325_v47 = vsel %vm214_vm1, %v291_v35, 0.0  ;;  %v240_v51 = vsel %vm214_vm1, %v194_v48, 0.0 }
  0x1b   : > { %v223_v17 = vadd.f32 %v222_v12, %v221_v14  ;;  %v294_v52 = vmul.f32 %v187_v16, %v187_v16  ;;  %v327_v53 = vsel %vm214_vm1, %v292_v38, 0.0  ;;  %v242_v57 = vsel %vm214_vm1, %v195_v54, 0.0  ;;  %v199_v14 = vld [vmem:[%s566_s17 + $0x90] sm:$0xff] }
  0x1c   : > { %v324_v50 = vadd.f32 %v323_v41, %v322_v44  ;;  %v295_v58 = vmul.f32 %v188_v19, %v188_v19  ;;  %v329_v59 = vsel %vm214_vm1, %v293_v46, 0.0  ;;  %v244_v63 = vsel %vm214_vm1, %v196_v60, 0.0  ;;  %v203_v38 = vld [vmem:[%s566_s17 + $0xb0] sm:$0xff]  ;;  %v204_v44 = vld [vmem:[%s566_s17 + $0xb8] sm:$0xff] }
  0x1d   : > { %v225_v20 = vadd.f32 %v224_v15, %v223_v17  ;;  %v296_v0 = vmul.f32 %v189_v22, %v189_v22  ;;  %v331_v1 = vsel %vm214_vm1, %v294_v52, 0.0  ;;  %v246_v5 = vsel %vm214_vm1, %v197_v2, 0.0 }
  0x1e   : > { %v326_v56 = vadd.f32 %v325_v47, %v324_v50  ;;  %v297_v6 = vmul.f32 %v190_v25, %v190_v25  ;;  %v333_v7 = vsel %vm214_vm1, %v295_v58, 0.0  ;;  %v248_v11 = vsel %vm214_vm1, %v198_v8, 0.0  ;;  %v205_v50 = vld [vmem:[%s566_s17 + $0xc0] sm:$0xff] }
  0x1f   : > { %v227_v23 = vadd.f32 %v226_v18, %v225_v20  ;;  %v298_v12 = vmul.f32 %v191_v31, %v191_v31  ;;  %v335_v13 = vsel %vm214_vm1, %v296_v0, 0.0  ;;  %v250_v17 = vsel %vm214_vm1, %v199_v14, 0.0  ;;  %v200_v20 = vld [vmem:[%s566_s17 + $0x98] sm:$0xff] }
  0x20   : > { %v328_v62 = vadd.f32 %v327_v53, %v326_v56  ;;  %v299_v18 = vmul.f32 %v192_v33, %v192_v33  ;;  %v337_v19 = vsel %vm214_vm1, %v297_v6, 0.0  ;;  %v301_v30 = vmul.f32 %v194_v48, %v194_v48  ;;  %v206_v56 = vld [vmem:[%s566_s17 + $0xc8] sm:$0xff] }
  0x21   : > { %v229_v26 = vadd.f32 %v228_v21, %v227_v23  ;;  %v252_v23 = vsel %vm214_vm1, %v200_v20, 0.0  ;;  %v339_v25 = vsel %vm214_vm1, %v298_v12, 0.0  ;;  %v258_v41 = vsel %vm214_vm1, %v203_v38, 0.0 }
  0x22   : > { %v330_v4 = vadd.f32 %v329_v59, %v328_v62  ;;  %v341_v31 = vsel %vm214_vm1, %v299_v18, 0.0  ;;  %v260_v47 = vsel %vm214_vm1, %v204_v44, 0.0  ;;  %v304_v48 = vmul.f32 %v197_v2, %v197_v2  ;;  %v207_v62 = vld [vmem:[%s566_s17 + $0xd0] sm:$0xff] }
  0x23   : > { %v231_v32 = vadd.f32 %v230_v24, %v229_v26  ;;  %v300_v24 = vmul.f32 %v193_v42, %v193_v42  ;;  %v201_v26 = vld [vmem:[%s566_s17 + $0xa0] sm:$0xff]  ;;  %v303_v42 = vmul.f32 %v196_v60, %v196_v60  ;;  %v262_v53 = vsel %vm214_vm1, %v205_v50, 0.0 }
  0x24   : > { %v332_v10 = vadd.f32 %v331_v1, %v330_v4  ;;  %v254_v29 = vsel %vm214_vm1, %v201_v26, 0.0  ;;  %v264_v59 = vsel %vm214_vm1, %v206_v56, 0.0  ;;  %v306_v60 = vmul.f32 %v199_v14, %v199_v14  ;;  %v208_v4 = vld [vmem:[%s566_s17 + $0xd8] sm:$0xff] }
  0x25   : > { %v233_v36 = vadd.f32 %v232_v27, %v231_v32  ;;  %v202_v32 = vld [vmem:[%s566_s17 + $0xa8] sm:$0xff]  ;;  %v266_v1 = vsel %vm214_vm1, %v207_v62, 0.0  ;;  %v307_v2 = vmul.f32 %v200_v20, %v200_v20  ;;  %v310_v20 = vmul.f32 %v203_v38, %v203_v38 }
  0x26   : > { %v334_v16 = vadd.f32 %v333_v7, %v332_v10  ;;  %v256_v35 = vsel %vm214_vm1, %v202_v32, 0.0  ;;  %v268_v7 = vsel %vm214_vm1, %v208_v4, 0.0  ;;  %v209_v10 = vld [vmem:[%s566_s17 + $0xe0] sm:$0xff]  ;;  %v309_v14 = vmul.f32 %v202_v32, %v202_v32 }
  0x27   : > { %v235_v43 = vadd.f32 %v234_v34, %v233_v36  ;;  %v302_v36 = vmul.f32 %v195_v54, %v195_v54  ;;  %v305_v54 = vmul.f32 %v198_v8, %v198_v8  ;;  %v308_v8 = vmul.f32 %v201_v26, %v201_v26 }
  0x28   : > { %v336_v22 = vadd.f32 %v335_v13, %v334_v16  ;;  %v270_v13 = vsel %vm214_vm1, %v209_v10, 0.0  ;;  %v210_v16 = vld [vmem:[%s566_s17 + $0xe8] sm:$0xff]  ;;  %v311_v26 = vmul.f32 %v204_v44, %v204_v44  ;;  %v312_v32 = vmul.f32 %v205_v50, %v205_v50 }
  0x29   : > { %v237_v49 = vadd.f32 %v236_v37, %v235_v43  ;;  %v343_v37 = vsel %vm214_vm1, %v300_v24, 0.0  ;;  %v345_v43 = vsel %vm214_vm1, %v301_v30, 0.0  ;;  %v315_v44 = vmul.f32 %v208_v4, %v208_v4 }
  0x2a   : > { %v338_v28 = vadd.f32 %v337_v19, %v336_v22  ;;  %v272_v19 = vsel %vm214_vm1, %v210_v16, 0.0  ;;  %v211_v22 = vld [vmem:[%s566_s17 + $0xf0] sm:$0xff] }
  0x2b   : > { %v239_v55 = vadd.f32 %v238_v45, %v237_v49  ;;  %v347_v49 = vsel %vm214_vm1, %v302_v36, 0.0  ;;  %v313_v36 = vmul.f32 %v206_v56, %v206_v56  ;;  %v318_v56 = vmul.f32 %v211_v22, %v211_v22 }
  0x2c   : > { %v340_v34 = vadd.f32 %v339_v25, %v338_v28  ;;  %v274_v25 = vsel %vm214_vm1, %v211_v22, 0.0  ;;  %v212_v28 = vld [vmem:[%s566_s17 + $0xf8] sm:$0xff] }
  0x2d   : > { %v241_v61 = vadd.f32 %v240_v51, %v239_v55  ;;  %v349_v55 = vsel %vm214_vm1, %v303_v42, 0.0 }
  0x2e   : > { %v342_v40 = vadd.f32 %v341_v31, %v340_v34  ;;  %v276_v31 = vsel %vm214_vm1, %v212_v28, 0.0 }
  0x2f   : > { %v243_v3 = vadd.f32 %v242_v57, %v241_v61  ;;  %v351_v61 = vsel %vm214_vm1, %v304_v48, 0.0  ;;  %v316_v48 = vmul.f32 %v209_v10, %v209_v10 }
  0x30   : > { %v344_v46 = vadd.f32 %v343_v37, %v342_v40  ;;  %v365_v37 = vsel %vm214_vm1, %v311_v26, 0.0  ;;  %v314_v40 = vmul.f32 %v207_v62, %v207_v62 }
  0x31   : > { %v245_v9 = vadd.f32 %v244_v63, %v243_v3  ;;  %v353_v3 = vsel %vm214_vm1, %v305_v54, 0.0 }
  0x32   : > { %v346_v52 = vadd.f32 %v345_v43, %v344_v46 }
  0x33   : > { %v247_v15 = vadd.f32 %v246_v5, %v245_v9  ;;  %v355_v9 = vsel %vm214_vm1, %v306_v60, 0.0  ;;  %v213_v60 = vld [vmem:[%s694_s1] sm:$0x1] }
  0x34   : > { %v348_v58 = vadd.f32 %v347_v49, %v346_v52  ;;  %v371_v49 = vsel %vm214_vm1, %v314_v40, 0.0  ;;  %v317_v52 = vmul.f32 %v210_v16, %v210_v16 }
  0x35   : > { %v249_v21 = vadd.f32 %v248_v11, %v247_v15  ;;  %v357_v15 = vsel %vm214_vm1, %v307_v2, 0.0 }
  0x36   : > { %v350_v0 = vadd.f32 %v349_v55, %v348_v58  ;;  %v377_v62 = vsel %vm214_vm1, %v317_v52, 0.0 }
  0x37   : > { %v251_v27 = vadd.f32 %v250_v17, %v249_v21  ;;  %v359_v21 = vsel %vm214_vm1, %v308_v8, 0.0 }
  0x38   : > { %v352_v6 = vadd.f32 %v351_v61, %v350_v0  ;;  %v319_v61 = vmul.f32 %v212_v28, %v212_v28 }
  0x39   : > { %v253_v33 = vadd.f32 %v252_v23, %v251_v27  ;;  %v361_v27 = vsel %vm214_vm1, %v309_v14, 0.0 }
  0x3a   : > { %v354_v12 = vadd.f32 %v353_v3, %v352_v6  ;;  %v381_v4 = vsel %vm214_vm1, %v319_v61, 0.0 }
  0x3b   : > { %v255_v39 = vadd.f32 %v254_v29, %v253_v33  ;;  %v363_v33 = vsel %vm214_vm1, %v310_v20, 0.0 }
  0x3c   : > { %v356_v18 = vadd.f32 %v355_v9, %v354_v12  ;;  %v287_v12 = vld [vmem:[%s695_s2] sm:$0x1] }
  0x3d   : > { %v257_v45 = vadd.f32 %v256_v35, %v255_v39 }
  0x3e   : > { %v358_v24 = vadd.f32 %v357_v15, %v356_v18 }
  0x3f   : > { %v259_v51 = vadd.f32 %v258_v41, %v257_v45  ;;  %v367_v41 = vsel %vm214_vm1, %v312_v32, 0.0  ;;  %v369_v45 = vsel %vm214_vm1, %v313_v36, 0.0 }
  0x40   : > { %v360_v30 = vadd.f32 %v359_v21, %v358_v24 }
  0x41   : > { %v261_v57 = vadd.f32 %v260_v47, %v259_v51 }
  0x42   : > { %v362_v35 = vadd.f32 %v361_v27, %v360_v30 }
  0x43   : > { %v263_v63 = vadd.f32 %v262_v53, %v261_v57  ;;  %v373_v53 = vsel %vm214_vm1, %v315_v44, 0.0  ;;  %v375_v57 = vsel %vm214_vm1, %v316_v48, 0.0 }
  0x44   : > { %v364_v39 = vadd.f32 %v363_v33, %v362_v35 }
  0x45   : > { %v265_v5 = vadd.f32 %v264_v59, %v263_v63 }
  0x46   : > { %v366_v43 = vadd.f32 %v365_v37, %v364_v39 }
  0x47   : > { %v267_v11 = vadd.f32 %v266_v1, %v265_v5  ;;  %v379_v1 = vsel %vm214_vm1, %v318_v56, 0.0 }
  0x48   : > { %v368_v47 = vadd.f32 %v367_v41, %v366_v43 }
  0x49   : > { %v269_v17 = vadd.f32 %v268_v7, %v267_v11 }
  0x4a   : > { %v370_v51 = vadd.f32 %v369_v45, %v368_v47 }
  0x4b   : > { %v271_v23 = vadd.f32 %v270_v13, %v269_v17 }
  0x4c   : > { %v372_v55 = vadd.f32 %v371_v49, %v370_v51 }
  0x4d   : > { %v273_v29 = vadd.f32 %v272_v19, %v271_v23 }
  0x4e   : > { %v374_v59 = vadd.f32 %v373_v53, %v372_v55 }
  0x4f   : > { %v275_v34 = vadd.f32 %v274_v25, %v273_v29 }
  0x50   : > { %v376_v0 = vadd.f32 %v375_v57, %v374_v59 }
  0x51   : > { %v277_v38 = vadd.f32 %v276_v31, %v275_v34 }
  0x52   : > { %v378_v3 = vadd.f32 %v377_v62, %v376_v0 }
  0x53   : > { %v278_v42 = vrot.slane %v277_v38, 4 }
  0x54   : > { %v380_v5 = vadd.f32 %v379_v1, %v378_v3 }
  0x55   : > { %v279_v46 = vadd.f32 %v278_v42, %v277_v38 }
  0x56   : > { %v382_v6 = vadd.f32 %v381_v4, %v380_v5 }
  0x57   : > { %v280_v50 = vrot.slane %v279_v46, 2 }
  0x58   : > { %v383_v7 = vrot.slane %v382_v6, 4 }
  0x59   : > { %v281_v54 = vadd.f32 %v280_v50, %v279_v46 }
  0x5a   : > { %v384_v8 = vadd.f32 %v383_v7, %v382_v6 }
  0x5b   : > { %v282_v58 = vrot.slane %v281_v54, 1 }
  0x5c   : > { %v385_v9 = vrot.slane %v384_v8, 2 }
  0x5d   : > { %v283_v63 = vadd.f32 %v282_v58, %v281_v54 }
  0x5e   : > { %v386_v10 = vadd.f32 %v385_v9, %v384_v8 }
  0x5f   : > { %v284_v2 = vadd.f32 %v283_v63, %v213_v60 }
  0x60   : > { %v387_v11 = vrot.slane %v386_v10, 1 }
  0x61   : > { %286 = vst.msk [vmem:[%s694_s1] sm:$0x1] %vm285_vm2, %v284_v2 }
  0x62   : > { %v388_v13 = vadd.f32 %v387_v11, %v386_v10 }
  0x64   : > { %v389_v14 = vadd.f32 %v388_v13, %v287_v12 }
  0x66   : > { %390 = vst.msk [vmem:[%s695_s2] sm:$0x1] %vm285_vm2, %v389_v14 }
  0x67 PF: > { %s13_s11 = sadd.s32 1, %s527_s11   ;;  %s696_s9 = smov %s523_s10 }
  0x68   : > { %p10_p6 = scmp.ge.s32.totalorder %s13_s11, 4   ;;  %s697_s10 = smov %s699_s12 }
  0x6a   :  { %12 = sbr.rel (!%p10_p6) target bundleno = 2 (0x2), region = 70 }

// kernel: lsn_later_forward.11
= control target key start
LH: loop header
LB: loop body
LE: loop exit
PB: predicated region body
PF: predicated region fallthrough
CT: control target
= control target key end

     0   :  { %8 = vsyncpa [#allocation3], 0  ;;  %s953_s0 = inlined_call_operand.vmem [shape: f32[512,32], index: 0, kind: input, shape index: {}]   ;;  %s954_s1 = inlined_call_operand.vmem [shape: f32[1,32], index: 1, kind: input, shape index: {}]   ;;  %s955_s2 = inlined_call_operand.vmem [shape: f32[1,32], index: 2, kind: input, shape index: {}]   ;;  %s956_s3 = inlined_call_operand.hbm [shape: f32[512,32], index: 3, kind: output, shape index: {}]  }
   0x1   :  { %10 = vsyncpa [#allocation3 + $0x1], 0  ;;  %s658_s12 = smov 0   ;;  %s660_s13 = smov 0  }
   0x2   :  { %s662_s14 = smov 0   ;;  %s664_s15 = smov 0  }
   0x3   :  { %s666_s16 = smov 0   ;;  %s668_s17 = smov 0  }
   0x4 LB: > { %s482_s18 = sadd.s32 4294967295, %s633_s17   ;;  %s483_s19 = sadd.s32 4294967294, %s633_s17   ;;  %s633_s17 = sphi %s668_s17, %s16_s17   ;;  %s629_s16 = sphi %s666_s16, %s963_s16   ;;  %s625_s15 = sphi %s664_s15, %s962_s15   ;;  %s621_s14 = sphi %s662_s14, %s961_s14   ;;  %s617_s13 = sphi %s660_s13, %s960_s13   ;;  %s613_s12 = sphi %s658_s12, %s959_s12  }
   0x5   : > { %s28_s20 = sadd.s32 1, %s629_s16  ;;  %s117_s21 = sadd.s32 1, %s621_s14 }
   0x6   : > { %p30_p0 = scmp.ge.s32.totalorder %s28_s20, 2  ;;  %p127_p1 = scmp.ne.s32.totalorder %s621_s14, %s617_s13 }
   0x7   : > { %p128_p2 = scmp.eq.s32.totalorder %s482_s18, 1  ;;  %p133_p3 = scmp.ne.s32.totalorder %s617_s13, %s613_s12 }
   0x8   : > { %s965_s20 = smov (%p30_p0, %s28_s20), 0  ;;  %p134_p5 = scmp.eq.s32.totalorder %s483_s19, 1 }
   0x9   : > { %p698_p4 = por %p128_p2, %p127_p1  ;;  %s112_s23 = ssub.s32 %s629_s16, %s965_s20 }
   0xa   : > { %p488_p6 = scmp.ge.s32.totalorder %s633_s17, 1  ;;  %p115_p7 = scmp.eq.s32.totalorder %s112_s23, 0 }
   0xb   : > { %p705_p8 = por %p134_p5, %p133_p3  ;;  %p176_p9 = scmp.lt.s32.totalorder %s633_s17, 3 }
   0xc   : > { %s711_s25 = scalar_select %p115_p7, %s621_s14, %s117_s21  }
   0xd   : > { %p177_p10 = pnand %p488_p6, %p176_p9 }
   0xe   : > { %s490_s26 = sshll.u32 (!%p177_p10), %s625_s15, 5  ;;  %s206_s27 = sand.u32 (!%p177_p10), 1, %s617_s13  }
   0xf   : > { %180 = sbr.rel (%p177_p10) target bundleno = 60 (0x3c), region = 32  ;;  %p210_p11 = scmp.lt.s32.totalorder (!%p177_p10), %s490_s26, 63 }
  0x10   : > { %s722_s4 = sshll.u32 (!%p177_p10), %s206_s27, 8  ;;  %s499_s11 = sshll.u32 (!%p177_p10), %s625_s15, 12 }
  0x11   : > { %s764_s10 = scalar_lea.vmem (!%p177_p10), [#allocation2], %s722_s4  ;;  %s891_s21 = scalar_lea.hbm (!%p177_p10), %s956_s3, %s499_s11 }
  0x12   : > { %s383_s18 = sshll.u32 (!%p177_p10), %s764_s10, 4  ;;  %s908_s23 = scalar_lea.sflag (!%p177_p10), [#allocation3], %s206_s27  ;;  %s893_s18 = int_to_ptr.vmem [resolvable:$true] %s383_s18 }
  0x14   : > { %s967_s26 = smov (!%p210_p11, %s490_s26), 63  ;;  %v718_v0 = vld [vmem:[%s954_s1] ss:$0 sm:$0xff]  ;;  %vm335_vm0 = vcmask 261120  }
  0x15   : > { %s491_s28 = sshll.u32 %s967_s26, 3  ;;  %v732_v1 = vld [vmem:[%s955_s2] ss:$0 sm:$0xff]  ;;  %s557_s26 = scalar_lea.vmem %s893_s18, 4096 }
  0x16   : > { %s727_s7 = scalar_lea.vmem %s953_s0, %s491_s28  ;;  %p558_p12 = scmp.ne.s32.totalorder %s893_s18, %s557_s26 }
  0x17   : > { %v225_v2 = vld [vmem:[%s727_s7] sm:$0xff]  ;;  %v226_v3 = vld [vmem:[%s727_s7 + $0x8] sm:$0xff]  ;;  %v227_v4 = vld [vmem:[%s727_s7 + $0x10] sm:$0xff]  ;;  %s635_s28 = smov [#allocation2]  }
  0x18   : > { %v264_v5 = vmul.f32 %v718_v0, %v225_v2  ;;  %v265_v6 = vmul.f32 %v718_v0, %v226_v3  ;;  %v266_v7 = vmul.f32 %v718_v0, %v227_v4  ;;  %v228_v8 = vld [vmem:[%s727_s7 + $0x18] sm:$0xff]  ;;  %v229_v9 = vld [vmem:[%s727_s7 + $0x20] sm:$0xff]  ;;  %v230_v10 = vld [vmem:[%s727_s7 + $0x28] sm:$0xff]  ;;  %p559_p13 = pnand %p558_p12, %p698_p4  ;;  %s561_s29 = sshll.u32 %s635_s28, 4  ;;  %s562_s29 = int_to_ptr.vmem [resolvable:$false] %s561_s29 }
  0x19   : > { %v267_v11 = vmul.f32 %v718_v0, %v228_v8  ;;  %v268_v12 = vmul.f32 %v718_v0, %v229_v9  ;;  %v269_v13 = vmul.f32 %v718_v0, %v230_v10  ;;  %v231_v14 = vld [vmem:[%s727_s7 + $0x30] sm:$0xff]  ;;  %v232_v15 = vld [vmem:[%s727_s7 + $0x38] sm:$0xff]  ;;  %v233_v16 = vld [vmem:[%s727_s7 + $0x40] sm:$0xff]  ;;  %s563_s30 = scalar_lea.vmem %s562_s29, 8192  ;;  %p564_p1 = scmp.lt.s32.totalorder %s893_s18, %s562_s29 }
  0x1a   : > { %v303_v17 = vadd.f32 %v732_v1, %v264_v5  ;;  %v304_v18 = vadd.f32 %v732_v1, %v265_v6  ;;  %v305_v19 = vadd.f32 %v732_v1, %v266_v7  ;;  %v270_v20 = vmul.f32 %v718_v0, %v231_v14  ;;  %v234_v21 = vld [vmem:[%s727_s7 + $0x48] sm:$0xff]  ;;  %v235_v22 = vld [vmem:[%s727_s7 + $0x50] sm:$0xff]  ;;  %v236_v23 = vld [vmem:[%s727_s7 + $0x58] sm:$0xff]  ;;  %p560_p0 = pneg %p559_p13  ;;  %p565_p2 = scmp.lt.s32.totalorder %s563_s30, %s557_s26 }
  0x1b   : > { %v306_v24 = vadd.f32 %v732_v1, %v267_v11  ;;  %v307_v25 = vadd.f32 %v732_v1, %v268_v12  ;;  %v308_v26 = vadd.f32 %v732_v1, %v269_v13  ;;  %v271_v27 = vmul.f32 %v718_v0, %v232_v15  ;;  %v237_v28 = vld [vmem:[%s727_s7 + $0x60] sm:$0xff]  ;;  %v238_v29 = vld [vmem:[%s727_s7 + $0x68] sm:$0xff]  ;;  %v239_v30 = vld [vmem:[%s727_s7 + $0x70] sm:$0xff] }
  0x1c   : > { %336 = vst.msk [vmem:[%s764_s10] sm:$0xff] %vm335_vm0, %v303_v17  ;;  %337 = vst.msk [vmem:[%s764_s10 + $0x8] sm:$0xff] %vm335_vm0, %v304_v18  ;;  %v309_v31 = vadd.f32 %v732_v1, %v270_v20  ;;  %v272_v32 = vmul.f32 %v718_v0, %v233_v16  ;;  %v273_v33 = vmul.f32 %v718_v0, %v234_v21  ;;  %v240_v35 = vld [vmem:[%s727_s7 + $0x78] sm:$0xff]  ;;  %v241_v40 = vld [vmem:[%s727_s7 + $0x80] sm:$0xff]  ;;  %p566_p3 = por %p565_p2, %p564_p1 }
  0x1d   : > { %338 = vst.msk [vmem:[%s764_s10 + $0x10] sm:$0xff] %vm335_vm0, %v305_v19  ;;  %v274_v34 = vmul.f32 %v718_v0, %v235_v22  ;;  %339 = vst.msk [vmem:[%s764_s10 + $0x18] sm:$0xff] %vm335_vm0, %v306_v24  ;;  %v310_v36 = vadd.f32 %v732_v1, %v271_v27  ;;  %v275_v37 = vmul.f32 %v718_v0, %v236_v23  ;;  %v242_v41 = vld [vmem:[%s727_s7 + $0x88] sm:$0xff]  ;;  %v243_v42 = vld [vmem:[%s727_s7 + $0x90] sm:$0xff] }
  0x1e   : > { %340 = vst.msk [vmem:[%s764_s10 + $0x20] sm:$0xff] %vm335_vm0, %v307_v25  ;;  %341 = vst.msk [vmem:[%s764_s10 + $0x28] sm:$0xff] %vm335_vm0, %v308_v26  ;;  %v276_v38 = vmul.f32 %v718_v0, %v237_v28  ;;  %v277_v39 = vmul.f32 %v718_v0, %v238_v29  ;;  %v311_v43 = vadd.f32 %v732_v1, %v272_v32  ;;  %v244_v47 = vld [vmem:[%s727_s7 + $0x98] sm:$0xff]  ;;  %v245_v48 = vld [vmem:[%s727_s7 + $0xa0] sm:$0xff]  ;;  %p567_p5 = pnand %p566_p3, %p560_p0 }
  0x1f   : > { %342 = vst.msk [vmem:[%s764_s10 + $0x30] sm:$0xff] %vm335_vm0, %v309_v31  ;;  %v312_v44 = vadd.f32 %v732_v1, %v273_v33  ;;  %v313_v45 = vadd.f32 %v732_v1, %v274_v34  ;;  %v278_v46 = vmul.f32 %v718_v0, %v239_v30  ;;  %v246_v49 = vld [vmem:[%s727_s7 + $0xa8] sm:$0xff]  ;;  %343 = vst.msk [vmem:[%s764_s10 + $0x38] sm:$0xff] %vm335_vm0, %v310_v36  ;;  %v247_v54 = vld [vmem:[%s727_s7 + $0xb0] sm:$0xff] }
  0x20   : > { %v314_v50 = vadd.f32 %v732_v1, %v275_v37  ;;  %v315_v51 = vadd.f32 %v732_v1, %v276_v38  ;;  %v316_v52 = vadd.f32 %v732_v1, %v277_v39  ;;  %v279_v53 = vmul.f32 %v718_v0, %v240_v35  ;;  %344 = vst.msk [vmem:[%s764_s10 + $0x40] sm:$0xff] %vm335_vm0, %v311_v43  ;;  %v248_v59 = vld [vmem:[%s727_s7 + $0xb8] sm:$0xff]  ;;  %v249_v2 = vld [vmem:[%s727_s7 + $0xc0] sm:$0xff]  ;;  %v250_v3 = vld [vmem:[%s727_s7 + $0xc8] sm:$0xff] }
  0x21   : > { %345 = vst.msk [vmem:[%s764_s10 + $0x48] sm:$0xff] %vm335_vm0, %v312_v44  ;;  %346 = vst.msk [vmem:[%s764_s10 + $0x50] sm:$0xff] %vm335_vm0, %v313_v45  ;;  %v317_v55 = vadd.f32 %v732_v1, %v278_v46  ;;  %v280_v56 = vmul.f32 %v718_v0, %v241_v40  ;;  %v281_v57 = vmul.f32 %v718_v0, %v242_v41  ;;  %v251_v4 = vld [vmem:[%s727_s7 + $0xd0] sm:$0xff]  ;;  %v252_v9 = vld [vmem:[%s727_s7 + $0xd8] sm:$0xff] }
  0x22   : > { %v282_v58 = vmul.f32 %v718_v0, %v243_v42  ;;  %347 = vst.msk [vmem:[%s764_s10 + $0x58] sm:$0xff] %vm335_vm0, %v314_v50  ;;  %348 = vst.msk [vmem:[%s764_s10 + $0x60] sm:$0xff] %vm335_vm0, %v315_v51  ;;  %v318_v60 = vadd.f32 %v732_v1, %v279_v53  ;;  %v283_v61 = vmul.f32 %v718_v0, %v244_v47  ;;  %v253_v10 = vld [vmem:[%s727_s7 + $0xe0] sm:$0xff]  ;;  %v254_v11 = vld [vmem:[%s727_s7 + $0xe8] sm:$0xff] }
  0x23   : > { %349 = vst.msk [vmem:[%s764_s10 + $0x68] sm:$0xff] %vm335_vm0, %v316_v52  ;;  %v284_v62 = vmul.f32 %v718_v0, %v245_v48  ;;  %v285_v63 = vmul.f32 %v718_v0, %v246_v49  ;;  %350 = vst.msk [vmem:[%s764_s10 + $0x70] sm:$0xff] %vm335_vm0, %v317_v55  ;;  %v319_v5 = vadd.f32 %v732_v1, %v280_v56  ;;  %v255_v16 = vld [vmem:[%s727_s7 + $0xf0] sm:$0xff]  ;;  %v256_v21 = vld [vmem:[%s727_s7 + $0xf8] sm:$0xff] }
  0x24   : > { %v320_v6 = vadd.f32 %v732_v1, %v281_v57  ;;  %v321_v7 = vadd.f32 %v732_v1, %v282_v58  ;;  %v286_v8 = vmul.f32 %v718_v0, %v247_v54  ;;  %351 = vst.msk [vmem:[%s764_s10 + $0x78] sm:$0xff] %vm335_vm0, %v318_v60  ;;  %v322_v12 = vadd.f32 %v732_v1, %v283_v61 }
  0x25   : > { %v323_v13 = vadd.f32 %v732_v1, %v284_v62  ;;  %v324_v14 = vadd.f32 %v732_v1, %v285_v63  ;;  %v287_v15 = vmul.f32 %v718_v0, %v248_v59  ;;  %352 = vst.msk [vmem:[%s764_s10 + $0x80] sm:$0xff] %vm335_vm0, %v319_v5  ;;  %v288_v18 = vmul.f32 %v718_v0, %v249_v2 }
  0x26   : > { %353 = vst.msk [vmem:[%s764_s10 + $0x88] sm:$0xff] %vm335_vm0, %v320_v6  ;;  %354 = vst.msk [vmem:[%s764_s10 + $0x90] sm:$0xff] %vm335_vm0, %v321_v7  ;;  %v325_v17 = vadd.f32 %v732_v1, %v286_v8  ;;  %v289_v19 = vmul.f32 %v718_v0, %v250_v3  ;;  %v290_v20 = vmul.f32 %v718_v0, %v251_v4 }
  0x27   : > { %355 = vst.msk [vmem:[%s764_s10 + $0x98] sm:$0xff] %vm335_vm0, %v322_v12  ;;  %356 = vst.msk [vmem:[%s764_s10 + $0xa0] sm:$0xff] %vm335_vm0, %v323_v13  ;;  %v326_v22 = vadd.f32 %v732_v1, %v287_v15  ;;  %v291_v23 = vmul.f32 %v718_v0, %v252_v9  ;;  %v292_v24 = vmul.f32 %v718_v0, %v253_v10 }
  0x28   : > { %357 = vst.msk [vmem:[%s764_s10 + $0xa8] sm:$0xff] %vm335_vm0, %v324_v14  ;;  %v293_v25 = vmul.f32 %v718_v0, %v254_v11  ;;  %358 = vst.msk [vmem:[%s764_s10 + $0xb0] sm:$0xff] %vm335_vm0, %v325_v17  ;;  %v327_v26 = vadd.f32 %v732_v1, %v288_v18  ;;  %v328_v27 = vadd.f32 %v732_v1, %v289_v19 }
  0x29   : > { %v329_v28 = vadd.f32 %v732_v1, %v290_v20  ;;  %v294_v29 = vmul.f32 %v718_v0, %v255_v16  ;;  %359 = vst.msk [vmem:[%s764_s10 + $0xb8] sm:$0xff] %vm335_vm0, %v326_v22  ;;  %v330_v30 = vadd.f32 %v732_v1, %v291_v23  ;;  %v331_v31 = vadd.f32 %v732_v1, %v292_v24 }
  0x2a   : > { %v332_v32 = vadd.f32 %v732_v1, %v293_v25  ;;  %v295_v33 = vmul.f32 %v718_v0, %v256_v21  ;;  %360 = vst.msk [vmem:[%s764_s10 + $0xc0] sm:$0xff] %vm335_vm0, %v327_v26  ;;  %361 = vst.msk [vmem:[%s764_s10 + $0xc8] sm:$0xff] %vm335_vm0, %v328_v27 }
  0x2b   : > { %362 = vst.msk [vmem:[%s764_s10 + $0xd0] sm:$0xff] %vm335_vm0, %v329_v28  ;;  %v333_v34 = vadd.f32 %v732_v1, %v294_v29  ;;  %363 = vst.msk [vmem:[%s764_s10 + $0xd8] sm:$0xff] %vm335_vm0, %v330_v30 }
  0x2c   : > { %364 = vst.msk [vmem:[%s764_s10 + $0xe0] sm:$0xff] %vm335_vm0, %v331_v31  ;;  %365 = vst.msk [vmem:[%s764_s10 + $0xe8] sm:$0xff] %vm335_vm0, %v332_v32  ;;  %v334_v0 = vadd.f32 %v732_v1, %v295_v33 }
  0x2d   : > { %366 = vst.msk [vmem:[%s764_s10 + $0xf0] sm:$0xff] %vm335_vm0, %v333_v34 }
  0x2e   : > { %367 = vst.msk [vmem:[%s764_s10 + $0xf8] sm:$0xff] %vm335_vm0, %v334_v0 }
  0x2f   : > { %570 = shalt.err (!%p567_p5)
}
  0x30   : > { %s571_s27 = scalar_lea.hbm %s891_s21, 4096  ;;  %s575_s6 = scalar_lea.hbm %s956_s3, 8192 }
  0x31   : > { %p572_p6 = scmp.ne.s32.totalorder %s891_s21, %s571_s27  ;;  %p576_p10 = scmp.lt.s32.totalorder %s891_s21, %s956_s3 }
  0x32   : > { %p577_p11 = scmp.lt.s32.totalorder %s575_s6, %s571_s27 }
  0x33   : > { %p573_p7 = pnand %p572_p6, %p698_p4 }
  0x34   : > { %p578_p12 = por %p577_p11, %p576_p10 }
  0x35   : > { %p574_p9 = pneg %p573_p7 }
  0x37   : > { %p579_p13 = pnand %p578_p12, %p574_p9 }
  0x39   : > { %582 = shalt.err (!%p579_p13)
}
  0x3a   : > { %s636_s9 = smov 128   ;;  %s637_s10 = smov 8  }
  0x3b   : > { %500 = dma.vmem_to_hbm [thread:$0]  (%p698_p4), %s893_s18, 4096, %s891_s21, %s908_s23, %s636_s9, %s636_s9, %s637_s10  }
  0x3c PF: > { %p506_p0 = scmp.ge.s32.totalorder %s633_s17, 2  ;;  %s398_s11 = sand.u32 1, %s613_s12  }
  0x3d   : > { %s399_s15 = scalar_lea.sflag [#allocation3], %s398_s11 }
  0x3e   : > { %p503_p1 = pnand %p506_p0, %p705_p8 }
  0x40   : > { %p504_p2 = pneg %p503_p1 }
  0x42   : > { %608 = dma.done.wait (%p504_p2), %s399_s15, 4096  }
  0x43   : > { %610 = vsyncadd (%p504_p2), %s399_s15, 4294963200  ;;  %s16_s17 = sadd.s32 1, %s633_s17   ;;  %s959_s12 = smov %s617_s13 }
  0x44   : > { %p13_p3 = scmp.ge.s32.totalorder %s16_s17, 4   ;;  %s960_s13 = smov %s621_s14 }
  0x45   : > { %s961_s14 = smov %s711_s25  ;;  %s962_s15 = smov %s629_s16 }
  0x46   : > { %s963_s16 = smov %s965_s20  ;;  %15 = sbr.rel (!%p13_p3) target bundleno = 4 (0x4), region = 73 }
  0x4b   :  { %404 = vsyncpa [#allocation3], 1 }
  0x4c   :  { %406 = vsyncpa [#allocation3 + $0x1], 1 }

// kernel: lsn_later_forward.9
= control target key start
LH: loop header
LB: loop body
LE: loop exit
PB: predicated region body
PF: predicated region fallthrough
CT: control target
= control target key end

     0   :  { %s1062_s9 = smov 0   ;;  %s1064_s10 = smov 0   ;;  %s1314_s0 = inlined_call_operand.vmem [shape: f32[512,8], index: 0, kind: input, shape index: {}]   ;;  %s1315_s1 = inlined_call_operand.vmem [shape: f32[8,32], index: 1, kind: input, shape index: {}]   ;;  %s1316_s2 = inlined_call_operand.vmem [shape: f32[512,32], index: 2, kind: output, shape index: {}]  }
   0x1   :  { %s1066_s11 = smov 0  }
   0x2 LB: > { %s31_s12 = sadd.s32 1, %s1040_s10  ;;  %p873_p0 = scmp.ge.s32.totalorder %s1044_s11, 1  ;;  %s1044_s11 = sphi %s1066_s11, %s12_s11   ;;  %s1040_s10 = sphi %s1064_s10, %s1319_s10   ;;  %s1036_s9 = sphi %s1062_s9, %s1318_s9  }
   0x3   : > { %p33_p1 = scmp.ge.s32.totalorder %s31_s12, 2  ;;  %p153_p2 = scmp.lt.s32.totalorder %s1044_s11, 3 }
   0x5   : > { %s1321_s12 = smov (%p33_p1, %s31_s12), 0  ;;  %p154_p3 = pnand %p873_p0, %p153_p2 }
   0x6   : > { %s874_s15 = sshll.u32 (!%p154_p3), %s1036_s9, 5 }
   0x7   : > { %157 = sbr.rel (%p154_p3) target bundleno = 252 (0xfc), region = 28  ;;  %p1088_p4 = scmp.lt.s32.totalorder (!%p154_p3), %s874_s15, 63 }
   0xc   : > { %v314_v0 = vld [vmem:[%s1315_s1] sm:$0xff]  ;;  %vm217_vm0 = vcmask 261120   ;;  %v1046_v1 = vmov 0.0   ;;  %s1323_s15 = smov (!%p1088_p4, %s874_s15), 63  ;;  %vm315_vm1 = vcmask 64512  }
   0xd   : > { %945 = vmatprep.subr.mxu0 %v314_v0  ;;  %995 = vmatprep.subr.mxu1 %v314_v0  ;;  %219 = vst.msk [vmem:[#allocation2 + $0x8] sm:$0xff] %vm217_vm0, %v1046_v1  ;;  %218 = vst.msk [vmem:[#allocation2] sm:$0xff] %vm217_vm0, %v1046_v1  ;;  %s875_s17 = sshll.u32 %s1323_s15, 3 }
   0xe   : > { %220 = vst.msk [vmem:[#allocation2 + $0x10] sm:$0xff] %vm217_vm0, %v1046_v1  ;;  %221 = vst.msk [vmem:[#allocation2 + $0x18] sm:$0xff] %vm217_vm0, %v1046_v1  ;;  %946 = vmatpush3.msra.mxu0 %v314_v0  ;;  %996 = vmatpush3.msra.mxu1 %v314_v0  ;;  %s1136_s20 = scalar_lea.vmem %s1314_s0, %s875_s17  ;;  %s1213_s23 = scalar_lea.vmem %s1316_s2, %s875_s17 }
   0xf   : > { %222 = vst.msk [vmem:[#allocation2 + $0x20] sm:$0xff] %vm217_vm0, %v1046_v1  ;;  %223 = vst.msk [vmem:[#allocation2 + $0x28] sm:$0xff] %vm217_vm0, %v1046_v1  ;;  %v282_v2 = vld [vmem:[%s1136_s20] sm:$0xff]  ;;  %v283_v4 = vld [vmem:[%s1136_s20 + $0x8] sm:$0xff] }
  0x10   : > { %224 = vst.msk [vmem:[#allocation2 + $0x30] sm:$0xff] %vm217_vm0, %v1046_v1  ;;  %225 = vst.msk [vmem:[#allocation2 + $0x38] sm:$0xff] %vm217_vm0, %v1046_v1  ;;  %v298_v3 = vld [vmem:[%s1136_s20 + $0x80] sm:$0xff]  ;;  %947 = vmatprep.mubr.msk.f32.mxu0 %vm315_vm1, %v282_v2  ;;  %v299_v5 = vld [vmem:[%s1136_s20 + $0x88] sm:$0xff] }
  0x11   : > { %226 = vst.msk [vmem:[#allocation2 + $0x40] sm:$0xff] %vm217_vm0, %v1046_v1  ;;  %227 = vst.msk [vmem:[#allocation2 + $0x48] sm:$0xff] %vm217_vm0, %v1046_v1  ;;  %971 = vmatprep.mubr.msk.f32.mxu1 %vm315_vm1, %v298_v3  ;;  %v284_v6 = vld [vmem:[%s1136_s20 + $0x10] sm:$0xff]  ;;  %948 = vmatmul.mubr.msk.f32.vlgmr.msra.gmra.mxu0 %vm315_vm1, %v283_v4  ;;  %v285_v8 = vld [vmem:[%s1136_s20 + $0x18] sm:$0xff] }
  0x12   : > { %228 = vst.msk [vmem:[#allocation2 + $0x50] sm:$0xff] %vm217_vm0, %v1046_v1  ;;  %229 = vst.msk [vmem:[#allocation2 + $0x58] sm:$0xff] %vm217_vm0, %v1046_v1  ;;  %v300_v7 = vld [vmem:[%s1136_s20 + $0x90] sm:$0xff]  ;;  %972 = vmatmul.mubr.msk.f32.vlgmr.msra.gmra.mxu1 %vm315_vm1, %v299_v5  ;;  %950 = vmatprep.mubr.msk.f32.mxu0 %vm315_vm1, %v284_v6  ;;  %v301_v9 = vld [vmem:[%s1136_s20 + $0x98] sm:$0xff] }
  0x13   : > { %230 = vst.msk [vmem:[#allocation2 + $0x60] sm:$0xff] %vm217_vm0, %v1046_v1  ;;  %231 = vst.msk [vmem:[#allocation2 + $0x68] sm:$0xff] %vm217_vm0, %v1046_v1  ;;  %974 = vmatprep.mubr.msk.f32.mxu1 %vm315_vm1, %v300_v7  ;;  %v286_v10 = vld [vmem:[%s1136_s20 + $0x20] sm:$0xff]  ;;  %v287_v12 = vld [vmem:[%s1136_s20 + $0x28] sm:$0xff] }
  0x14   : > { %232 = vst.msk [vmem:[#allocation2 + $0x70] sm:$0xff] %vm217_vm0, %v1046_v1  ;;  %233 = vst.msk [vmem:[#allocation2 + $0x78] sm:$0xff] %vm217_vm0, %v1046_v1  ;;  %v302_v11 = vld [vmem:[%s1136_s20 + $0xa0] sm:$0xff]  ;;  %v303_v13 = vld [vmem:[%s1136_s20 + $0xa8] sm:$0xff] }
  0x15   : > { %234 = vst.msk [vmem:[#allocation2 + $0x80] sm:$0xff] %vm217_vm0, %v1046_v1  ;;  %235 = vst.msk [vmem:[#allocation2 + $0x88] sm:$0xff] %vm217_vm0, %v1046_v1  ;;  %951 = vmatmul.mubr.msk.f32.gmra.mxu0 %vm315_vm1, %v285_v8  ;;  %v288_v14 = vld [vmem:[%s1136_s20 + $0x30] sm:$0xff]  ;;  %v289_v16 = vld [vmem:[%s1136_s20 + $0x38] sm:$0xff] }
  0x16   : > { %236 = vst.msk [vmem:[#allocation2 + $0x90] sm:$0xff] %vm217_vm0, %v1046_v1  ;;  %237 = vst.msk [vmem:[#allocation2 + $0x98] sm:$0xff] %vm217_vm0, %v1046_v1  ;;  %975 = vmatmul.mubr.msk.f32.gmra.mxu1 %vm315_vm1, %v301_v9  ;;  %953 = vmatprep.mubr.msk.f32.mxu0 %vm315_vm1, %v286_v10  ;;  %v304_v15 = vld [vmem:[%s1136_s20 + $0xb0] sm:$0xff]  ;;  %v305_v17 = vld [vmem:[%s1136_s20 + $0xb8] sm:$0xff] }
  0x17   : > { %238 = vst.msk [vmem:[#allocation2 + $0xa0] sm:$0xff] %vm217_vm0, %v1046_v1  ;;  %239 = vst.msk [vmem:[#allocation2 + $0xa8] sm:$0xff] %vm217_vm0, %v1046_v1  ;;  %977 = vmatprep.mubr.msk.f32.mxu1 %vm315_vm1, %v302_v11  ;;  %v290_v18 = vld [vmem:[%s1136_s20 + $0x40] sm:$0xff]  ;;  %v291_v20 = vld [vmem:[%s1136_s20 + $0x48] sm:$0xff] }
  0x18   : > { %240 = vst.msk [vmem:[#allocation2 + $0xb0] sm:$0xff] %vm217_vm0, %v1046_v1  ;;  %241 = vst.msk [vmem:[#allocation2 + $0xb8] sm:$0xff] %vm217_vm0, %v1046_v1  ;;  %v306_v19 = vld [vmem:[%s1136_s20 + $0xc0] sm:$0xff]  ;;  %v307_v21 = vld [vmem:[%s1136_s20 + $0xc8] sm:$0xff] }
  0x19   : > { %242 = vst.msk [vmem:[#allocation2 + $0xc0] sm:$0xff] %vm217_vm0, %v1046_v1  ;;  %243 = vst.msk [vmem:[#allocation2 + $0xc8] sm:$0xff] %vm217_vm0, %v1046_v1  ;;  %954 = vmatmul.mubr.msk.f32.gmra.mxu0 %vm315_vm1, %v287_v12  ;;  %v292_v22 = vld [vmem:[%s1136_s20 + $0x50] sm:$0xff]  ;;  %v293_v24 = vld [vmem:[%s1136_s20 + $0x58] sm:$0xff] }
  0x1a   : > { %244 = vst.msk [vmem:[#allocation2 + $0xd0] sm:$0xff] %vm217_vm0, %v1046_v1  ;;  %245 = vst.msk [vmem:[#allocation2 + $0xd8] sm:$0xff] %vm217_vm0, %v1046_v1  ;;  %978 = vmatmul.mubr.msk.f32.gmra.mxu1 %vm315_vm1, %v303_v13  ;;  %956 = vmatprep.mubr.msk.f32.mxu0 %vm315_vm1, %v288_v14  ;;  %v308_v23 = vld [vmem:[%s1136_s20 + $0xd0] sm:$0xff]  ;;  %v309_v25 = vld [vmem:[%s1136_s20 + $0xd8] sm:$0xff] }
  0x1b   : > { %246 = vst.msk [vmem:[#allocation2 + $0xe0] sm:$0xff] %vm217_vm0, %v1046_v1  ;;  %247 = vst.msk [vmem:[#allocation2 + $0xe8] sm:$0xff] %vm217_vm0, %v1046_v1  ;;  %980 = vmatprep.mubr.msk.f32.mxu1 %vm315_vm1, %v304_v15  ;;  %v294_v26 = vld [vmem:[%s1136_s20 + $0x60] sm:$0xff]  ;;  %v295_v28 = vld [vmem:[%s1136_s20 + $0x68] sm:$0xff] }
  0x1c   : > { %248 = vst.msk [vmem:[#allocation2 + $0xf0] sm:$0xff] %vm217_vm0, %v1046_v1  ;;  %249 = vst.msk [vmem:[#allocation2 + $0xf8] sm:$0xff] %vm217_vm0, %v1046_v1  ;;  %v310_v27 = vld [vmem:[%s1136_s20 + $0xe0] sm:$0xff]  ;;  %v311_v29 = vld [vmem:[%s1136_s20 + $0xe8] sm:$0xff] }
  0x1d   : > { %957 = vmatmul.mubr.msk.f32.gmra.mxu0 %vm315_vm1, %v289_v16  ;;  %v296_v30 = vld [vmem:[%s1136_s20 + $0x70] sm:$0xff]  ;;  %v297_v32 = vld [vmem:[%s1136_s20 + $0x78] sm:$0xff]  ;;  %v251_v34 = vld [vmem:[#allocation2 + $0x8] sm:$0xff] }
  0x1e   : > { %981 = vmatmul.mubr.msk.f32.gmra.mxu1 %vm315_vm1, %v305_v17  ;;  %959 = vmatprep.mubr.msk.f32.mxu0 %vm315_vm1, %v290_v18  ;;  %v312_v31 = vld [vmem:[%s1136_s20 + $0xf0] sm:$0xff]  ;;  %v313_v33 = vld [vmem:[%s1136_s20 + $0xf8] sm:$0xff]  ;;  %v267_v35 = vld [vmem:[#allocation2 + $0x88] sm:$0xff] }
  0x1f   : > { %983 = vmatprep.mubr.msk.f32.mxu1 %vm315_vm1, %v306_v19  ;;  %v250_v38 = vld [vmem:[#allocation2] sm:$0xff]  ;;  %v253_v44 = vld [vmem:[#allocation2 + $0x18] sm:$0xff]  ;;  %v252_v50 = vld [vmem:[#allocation2 + $0x10] sm:$0xff] }
  0x20   : > { %v266_v39 = vld [vmem:[#allocation2 + $0x80] sm:$0xff]  ;;  %v269_v45 = vld [vmem:[#allocation2 + $0x98] sm:$0xff]  ;;  %v268_v51 = vld [vmem:[#allocation2 + $0x90] sm:$0xff] }
  0x21   : > { %960 = vmatmul.mubr.msk.f32.gmra.mxu0 %vm315_vm1, %v291_v20  ;;  %v255_v56 = vld [vmem:[#allocation2 + $0x28] sm:$0xff]  ;;  %v254_v62 = vld [vmem:[#allocation2 + $0x20] sm:$0xff]  ;;  %v257_v2 = vld [vmem:[#allocation2 + $0x38] sm:$0xff] }
  0x22   : > { %984 = vmatmul.mubr.msk.f32.gmra.mxu1 %vm315_vm1, %v307_v21  ;;  %962 = vmatprep.mubr.msk.f32.mxu0 %vm315_vm1, %v292_v22  ;;  %v271_v57 = vld [vmem:[#allocation2 + $0xa8] sm:$0xff]  ;;  %v270_v63 = vld [vmem:[#allocation2 + $0xa0] sm:$0xff]  ;;  %v273_v7 = vld [vmem:[#allocation2 + $0xb8] sm:$0xff] }
  0x23   : > { %986 = vmatprep.mubr.msk.f32.mxu1 %vm315_vm1, %v308_v23  ;;  %v256_v10 = vld [vmem:[#allocation2 + $0x30] sm:$0xff]  ;;  %v259_v18 = vld [vmem:[#allocation2 + $0x48] sm:$0xff] }
  0x24   : > { %v272_v15 = vld [vmem:[#allocation2 + $0xb0] sm:$0xff]  ;;  %v275_v23 = vld [vmem:[#allocation2 + $0xc8] sm:$0xff] }
  0x25   : > { %963 = vmatmul.mubr.msk.f32.gmra.mxu0 %vm315_vm1, %v293_v24 }
  0x26   : > { %987 = vmatmul.mubr.msk.f32.gmra.mxu1 %vm315_vm1, %v309_v25  ;;  %965 = vmatprep.mubr.msk.f32.mxu0 %vm315_vm1, %v294_v26  ;;  %v258_v26 = vld [vmem:[#allocation2 + $0x40] sm:$0xff] }
  0x27   : > { %989 = vmatprep.mubr.msk.f32.mxu1 %vm315_vm1, %v310_v27 }
  0x29   : > { %966 = vmatmul.mubr.msk.f32.gmra.mxu0 %vm315_vm1, %v295_v28 }
  0x2a   : > { %990 = vmatmul.mubr.msk.f32.gmra.mxu1 %vm315_vm1, %v311_v29  ;;  %968 = vmatprep.mubr.msk.f32.mxu0 %vm315_vm1, %v296_v30 }
  0x2b   : > { %992 = vmatprep.mubr.msk.f32.mxu1 %vm315_vm1, %v312_v31  ;;  %v274_v31 = vld [vmem:[#allocation2 + $0xc0] sm:$0xff] }
  0x2d   : > { %969 = vmatmul.mubr.msk.f32.gmra.mxu0 %vm315_vm1, %v297_v32 }
  0x2e   : > { %993 = vmatmul.mubr.msk.f32.gmra.mxu1 %vm315_vm1, %v313_v33 }
  0xd1   : > { %v949_v36 = vpop.f32.mrf.mxu0 }
  0xd2   : > { %v973_v37 = vpop.f32.mrf.mxu1  ;;  %v638_v40 = vadd.f32 %v949_v36, %v251_v34  ;;  %v261_v34 = vld [vmem:[#allocation2 + $0x58] sm:$0xff] }
  0xd3   : > { %v654_v41 = vadd.f32 %v973_v37, %v267_v35  ;;  %v478_v42 = vpop.f32.mrf.mxu0 }
  0xd4   : > { %v558_v43 = vpop.f32.mrf.mxu1  ;;  %671 = vst.msk [vmem:[#allocation2 + $0x8] sm:$0xff] %vm217_vm0, %v638_v40  ;;  %v637_v46 = vadd.f32 %v478_v42, %v250_v38  ;;  %v260_v42 = vld [vmem:[#allocation2 + $0x50] sm:$0xff] }
  0xd5   : > { %687 = vst.msk [vmem:[#allocation2 + $0x88] sm:$0xff] %vm217_vm0, %v654_v41  ;;  %v653_v47 = vadd.f32 %v558_v43, %v266_v39  ;;  %v952_v48 = vpop.f32.mrf.mxu0  ;;  %v277_v39 = vld [vmem:[#allocation2 + $0xd8] sm:$0xff] }
  0xd6   : > { %v976_v49 = vpop.f32.mrf.mxu1  ;;  %670 = vst.msk [vmem:[#allocation2] sm:$0xff] %vm217_vm0, %v637_v46  ;;  %v640_v52 = vadd.f32 %v952_v48, %v253_v44 }
  0xd7   : > { %686 = vst.msk [vmem:[#allocation2 + $0x80] sm:$0xff] %vm217_vm0, %v653_v47  ;;  %v656_v53 = vadd.f32 %v976_v49, %v269_v45  ;;  %v488_v54 = vpop.f32.mrf.mxu0  ;;  %v276_v47 = vld [vmem:[#allocation2 + $0xd0] sm:$0xff] }
  0xd8   : > { %v568_v55 = vpop.f32.mrf.mxu1  ;;  %673 = vst.msk [vmem:[#allocation2 + $0x18] sm:$0xff] %vm217_vm0, %v640_v52  ;;  %v639_v58 = vadd.f32 %v488_v54, %v252_v50  ;;  %v263_v50 = vld [vmem:[#allocation2 + $0x68] sm:$0xff] }
  0xd9   : > { %689 = vst.msk [vmem:[#allocation2 + $0x98] sm:$0xff] %vm217_vm0, %v656_v53  ;;  %v655_v59 = vadd.f32 %v568_v55, %v268_v51  ;;  %v955_v60 = vpop.f32.mrf.mxu0  ;;  %v279_v55 = vld [vmem:[#allocation2 + $0xe8] sm:$0xff] }
  0xda   : > { %v979_v61 = vpop.f32.mrf.mxu1  ;;  %672 = vst.msk [vmem:[#allocation2 + $0x10] sm:$0xff] %vm217_vm0, %v639_v58  ;;  %v642_v0 = vadd.f32 %v955_v60, %v255_v56  ;;  %v262_v58 = vld [vmem:[#allocation2 + $0x60] sm:$0xff] }
  0xdb   : > { %688 = vst.msk [vmem:[#allocation2 + $0x90] sm:$0xff] %vm217_vm0, %v655_v59  ;;  %v658_v1 = vadd.f32 %v979_v61, %v271_v57  ;;  %v706_v3 = vld [vmem:[#allocation2 + $0x8] sm:$0xff]  ;;  %v498_v5 = vpop.f32.mrf.mxu0 }
  0xdc   : > { %v722_v4 = vld [vmem:[#allocation2 + $0x88] sm:$0xff]  ;;  %v578_v6 = vpop.f32.mrf.mxu1  ;;  %738 = vst.msk [vmem:[%s1213_s23 + $0x8] sm:$0xff] %vm217_vm0, %v706_v3  ;;  %675 = vst.msk [vmem:[#allocation2 + $0x28] sm:$0xff] %vm217_vm0, %v642_v0  ;;  %v641_v8 = vadd.f32 %v498_v5, %v254_v62 }
  0xdd   : > { %754 = vst.msk [vmem:[%s1213_s23 + $0x88] sm:$0xff] %vm217_vm0, %v722_v4  ;;  %691 = vst.msk [vmem:[#allocation2 + $0xa8] sm:$0xff] %vm217_vm0, %v658_v1  ;;  %v657_v9 = vadd.f32 %v578_v6, %v270_v63  ;;  %v705_v11 = vld [vmem:[#allocation2] sm:$0xff]  ;;  %v958_v13 = vpop.f32.mrf.mxu0 }
  0xde   : > { %v721_v12 = vld [vmem:[#allocation2 + $0x80] sm:$0xff]  ;;  %v982_v14 = vpop.f32.mrf.mxu1  ;;  %737 = vst.msk [vmem:[%s1213_s23] sm:$0xff] %vm217_vm0, %v705_v11  ;;  %674 = vst.msk [vmem:[#allocation2 + $0x20] sm:$0xff] %vm217_vm0, %v641_v8  ;;  %v644_v16 = vadd.f32 %v958_v13, %v257_v2  ;;  %v265_v2 = vld [vmem:[#allocation2 + $0x78] sm:$0xff] }
  0xdf   : > { %753 = vst.msk [vmem:[%s1213_s23 + $0x80] sm:$0xff] %vm217_vm0, %v721_v12  ;;  %690 = vst.msk [vmem:[#allocation2 + $0xa0] sm:$0xff] %vm217_vm0, %v657_v9  ;;  %v660_v17 = vadd.f32 %v982_v14, %v273_v7  ;;  %v708_v19 = vld [vmem:[#allocation2 + $0x18] sm:$0xff]  ;;  %v508_v21 = vpop.f32.mrf.mxu0  ;;  %v278_v63 = vld [vmem:[#allocation2 + $0xe0] sm:$0xff] }
  0xe0   : > { %v724_v20 = vld [vmem:[#allocation2 + $0x98] sm:$0xff]  ;;  %v588_v22 = vpop.f32.mrf.mxu1  ;;  %740 = vst.msk [vmem:[%s1213_s23 + $0x18] sm:$0xff] %vm217_vm0, %v708_v19  ;;  %677 = vst.msk [vmem:[#allocation2 + $0x38] sm:$0xff] %vm217_vm0, %v644_v16  ;;  %v643_v24 = vadd.f32 %v508_v21, %v256_v10  ;;  %v264_v10 = vld [vmem:[#allocation2 + $0x70] sm:$0xff] }
  0xe1   : > { %756 = vst.msk [vmem:[%s1213_s23 + $0x98] sm:$0xff] %vm217_vm0, %v724_v20  ;;  %693 = vst.msk [vmem:[#allocation2 + $0xb8] sm:$0xff] %vm217_vm0, %v660_v17  ;;  %v659_v25 = vadd.f32 %v588_v22, %v272_v15  ;;  %v707_v27 = vld [vmem:[#allocation2 + $0x10] sm:$0xff]  ;;  %v961_v29 = vpop.f32.mrf.mxu0  ;;  %v281_v7 = vld [vmem:[#allocation2 + $0xf8] sm:$0xff] }
  0xe2   : > { %v723_v28 = vld [vmem:[#allocation2 + $0x90] sm:$0xff]  ;;  %v985_v30 = vpop.f32.mrf.mxu1  ;;  %739 = vst.msk [vmem:[%s1213_s23 + $0x10] sm:$0xff] %vm217_vm0, %v707_v27  ;;  %676 = vst.msk [vmem:[#allocation2 + $0x30] sm:$0xff] %vm217_vm0, %v643_v24  ;;  %v646_v32 = vadd.f32 %v961_v29, %v259_v18 }
  0xe3   : > { %755 = vst.msk [vmem:[%s1213_s23 + $0x90] sm:$0xff] %vm217_vm0, %v723_v28  ;;  %692 = vst.msk [vmem:[#allocation2 + $0xb0] sm:$0xff] %vm217_vm0, %v659_v25  ;;  %v662_v33 = vadd.f32 %v985_v30, %v275_v23  ;;  %v710_v35 = vld [vmem:[#allocation2 + $0x28] sm:$0xff]  ;;  %v518_v37 = vpop.f32.mrf.mxu0  ;;  %v280_v15 = vld [vmem:[#allocation2 + $0xf0] sm:$0xff] }
  0xe4   : > { %v726_v36 = vld [vmem:[#allocation2 + $0xa8] sm:$0xff]  ;;  %v598_v38 = vpop.f32.mrf.mxu1  ;;  %742 = vst.msk [vmem:[%s1213_s23 + $0x28] sm:$0xff] %vm217_vm0, %v710_v35  ;;  %679 = vst.msk [vmem:[#allocation2 + $0x48] sm:$0xff] %vm217_vm0, %v646_v32  ;;  %v645_v40 = vadd.f32 %v518_v37, %v258_v26 }
  0xe5   : > { %758 = vst.msk [vmem:[%s1213_s23 + $0xa8] sm:$0xff] %vm217_vm0, %v726_v36  ;;  %695 = vst.msk [vmem:[#allocation2 + $0xc8] sm:$0xff] %vm217_vm0, %v662_v33  ;;  %v661_v41 = vadd.f32 %v598_v38, %v274_v31  ;;  %v709_v43 = vld [vmem:[#allocation2 + $0x20] sm:$0xff]  ;;  %v964_v45 = vpop.f32.mrf.mxu0 }
  0xe6   : > { %v725_v44 = vld [vmem:[#allocation2 + $0xa0] sm:$0xff]  ;;  %v988_v46 = vpop.f32.mrf.mxu1  ;;  %741 = vst.msk [vmem:[%s1213_s23 + $0x20] sm:$0xff] %vm217_vm0, %v709_v43  ;;  %678 = vst.msk [vmem:[#allocation2 + $0x40] sm:$0xff] %vm217_vm0, %v645_v40  ;;  %v648_v48 = vadd.f32 %v964_v45, %v261_v34 }
  0xe7   : > { %757 = vst.msk [vmem:[%s1213_s23 + $0xa0] sm:$0xff] %vm217_vm0, %v725_v44  ;;  %694 = vst.msk [vmem:[#allocation2 + $0xc0] sm:$0xff] %vm217_vm0, %v661_v41  ;;  %v664_v49 = vadd.f32 %v988_v46, %v277_v39  ;;  %v712_v51 = vld [vmem:[#allocation2 + $0x38] sm:$0xff]  ;;  %v528_v53 = vpop.f32.mrf.mxu0 }
  0xe8   : > { %v728_v52 = vld [vmem:[#allocation2 + $0xb8] sm:$0xff]  ;;  %v608_v54 = vpop.f32.mrf.mxu1  ;;  %744 = vst.msk [vmem:[%s1213_s23 + $0x38] sm:$0xff] %vm217_vm0, %v712_v51  ;;  %681 = vst.msk [vmem:[#allocation2 + $0x58] sm:$0xff] %vm217_vm0, %v648_v48  ;;  %v647_v56 = vadd.f32 %v528_v53, %v260_v42 }
  0xe9   : > { %760 = vst.msk [vmem:[%s1213_s23 + $0xb8] sm:$0xff] %vm217_vm0, %v728_v52  ;;  %697 = vst.msk [vmem:[#allocation2 + $0xd8] sm:$0xff] %vm217_vm0, %v664_v49  ;;  %v663_v57 = vadd.f32 %v608_v54, %v276_v47  ;;  %v711_v59 = vld [vmem:[#allocation2 + $0x30] sm:$0xff]  ;;  %v967_v61 = vpop.f32.mrf.mxu0 }
  0xea   : > { %v727_v60 = vld [vmem:[#allocation2 + $0xb0] sm:$0xff]  ;;  %v991_v62 = vpop.f32.mrf.mxu1  ;;  %743 = vst.msk [vmem:[%s1213_s23 + $0x30] sm:$0xff] %vm217_vm0, %v711_v59  ;;  %680 = vst.msk [vmem:[#allocation2 + $0x50] sm:$0xff] %vm217_vm0, %v647_v56  ;;  %v650_v0 = vadd.f32 %v967_v61, %v263_v50 }
  0xeb   : > { %759 = vst.msk [vmem:[%s1213_s23 + $0xb0] sm:$0xff] %vm217_vm0, %v727_v60  ;;  %696 = vst.msk [vmem:[#allocation2 + $0xd0] sm:$0xff] %vm217_vm0, %v663_v57  ;;  %v666_v1 = vadd.f32 %v991_v62, %v279_v55  ;;  %v714_v3 = vld [vmem:[#allocation2 + $0x48] sm:$0xff]  ;;  %v538_v5 = vpop.f32.mrf.mxu0 }
  0xec   : > { %v730_v4 = vld [vmem:[#allocation2 + $0xc8] sm:$0xff]  ;;  %v618_v6 = vpop.f32.mrf.mxu1  ;;  %746 = vst.msk [vmem:[%s1213_s23 + $0x48] sm:$0xff] %vm217_vm0, %v714_v3  ;;  %683 = vst.msk [vmem:[#allocation2 + $0x68] sm:$0xff] %vm217_vm0, %v650_v0  ;;  %v649_v8 = vadd.f32 %v538_v5, %v262_v58 }
  0xed   : > { %762 = vst.msk [vmem:[%s1213_s23 + $0xc8] sm:$0xff] %vm217_vm0, %v730_v4  ;;  %699 = vst.msk [vmem:[#allocation2 + $0xe8] sm:$0xff] %vm217_vm0, %v666_v1  ;;  %v665_v9 = vadd.f32 %v618_v6, %v278_v63  ;;  %v713_v11 = vld [vmem:[#allocation2 + $0x40] sm:$0xff]  ;;  %v970_v13 = vpop.f32.mrf.mxu0 }
  0xee   : > { %v729_v12 = vld [vmem:[#allocation2 + $0xc0] sm:$0xff]  ;;  %v994_v14 = vpop.f32.mrf.mxu1  ;;  %745 = vst.msk [vmem:[%s1213_s23 + $0x40] sm:$0xff] %vm217_vm0, %v713_v11  ;;  %682 = vst.msk [vmem:[#allocation2 + $0x60] sm:$0xff] %vm217_vm0, %v649_v8  ;;  %v652_v16 = vadd.f32 %v970_v13, %v265_v2 }
  0xef   : > { %761 = vst.msk [vmem:[%s1213_s23 + $0xc0] sm:$0xff] %vm217_vm0, %v729_v12  ;;  %698 = vst.msk [vmem:[#allocation2 + $0xe0] sm:$0xff] %vm217_vm0, %v665_v9  ;;  %v668_v17 = vadd.f32 %v994_v14, %v281_v7  ;;  %v716_v18 = vld [vmem:[#allocation2 + $0x58] sm:$0xff]  ;;  %v548_v20 = vpop.f32.mrf.mxu0 }
  0xf0   : > { %v732_v19 = vld [vmem:[#allocation2 + $0xd8] sm:$0xff]  ;;  %v628_v21 = vpop.f32.mrf.mxu1  ;;  %748 = vst.msk [vmem:[%s1213_s23 + $0x58] sm:$0xff] %vm217_vm0, %v716_v18  ;;  %685 = vst.msk [vmem:[#allocation2 + $0x78] sm:$0xff] %vm217_vm0, %v652_v16  ;;  %v651_v22 = vadd.f32 %v548_v20, %v264_v10 }
  0xf1   : > { %764 = vst.msk [vmem:[%s1213_s23 + $0xd8] sm:$0xff] %vm217_vm0, %v732_v19  ;;  %701 = vst.msk [vmem:[#allocation2 + $0xf8] sm:$0xff] %vm217_vm0, %v668_v17  ;;  %v667_v23 = vadd.f32 %v628_v21, %v280_v15  ;;  %v715_v24 = vld [vmem:[#allocation2 + $0x50] sm:$0xff] }
  0xf2   : > { %v731_v25 = vld [vmem:[#allocation2 + $0xd0] sm:$0xff]  ;;  %747 = vst.msk [vmem:[%s1213_s23 + $0x50] sm:$0xff] %vm217_vm0, %v715_v24  ;;  %684 = vst.msk [vmem:[#allocation2 + $0x70] sm:$0xff] %vm217_vm0, %v651_v22 }
  0xf3   : > { %763 = vst.msk [vmem:[%s1213_s23 + $0xd0] sm:$0xff] %vm217_vm0, %v731_v25  ;;  %700 = vst.msk [vmem:[#allocation2 + $0xf0] sm:$0xff] %vm217_vm0, %v667_v23  ;;  %v718_v26 = vld [vmem:[#allocation2 + $0x68] sm:$0xff] }
  0xf4   : > { %v734_v27 = vld [vmem:[#allocation2 + $0xe8] sm:$0xff]  ;;  %750 = vst.msk [vmem:[%s1213_s23 + $0x68] sm:$0xff] %vm217_vm0, %v718_v26 }
  0xf5   : > { %766 = vst.msk [vmem:[%s1213_s23 + $0xe8] sm:$0xff] %vm217_vm0, %v734_v27  ;;  %v717_v28 = vld [vmem:[#allocation2 + $0x60] sm:$0xff] }
  0xf6   : > { %v733_v29 = vld [vmem:[#allocation2 + $0xe0] sm:$0xff]  ;;  %749 = vst.msk [vmem:[%s1213_s23 + $0x60] sm:$0xff] %vm217_vm0, %v717_v28 }
  0xf7   : > { %765 = vst.msk [vmem:[%s1213_s23 + $0xe0] sm:$0xff] %vm217_vm0, %v733_v29  ;;  %v720_v30 = vld [vmem:[#allocation2 + $0x78] sm:$0xff] }
  0xf8   : > { %v736_v31 = vld [vmem:[#allocation2 + $0xf8] sm:$0xff]  ;;  %752 = vst.msk [vmem:[%s1213_s23 + $0x78] sm:$0xff] %vm217_vm0, %v720_v30 }
  0xf9   : > { %768 = vst.msk [vmem:[%s1213_s23 + $0xf8] sm:$0xff] %vm217_vm0, %v736_v31  ;;  %v719_v32 = vld [vmem:[#allocation2 + $0x70] sm:$0xff] }
  0xfa   : > { %v735_v33 = vld [vmem:[#allocation2 + $0xf0] sm:$0xff]  ;;  %751 = vst.msk [vmem:[%s1213_s23 + $0x70] sm:$0xff] %vm217_vm0, %v719_v32 }
  0xfb   : > { %767 = vst.msk [vmem:[%s1213_s23 + $0xf0] sm:$0xff] %vm217_vm0, %v735_v33 }
  0xfc PF: > { %s12_s11 = sadd.s32 1, %s1044_s11   ;;  %s1318_s9 = smov %s1040_s10 }
  0xfd   : > { %p9_p5 = scmp.ge.s32.totalorder %s12_s11, 4   ;;  %s1319_s10 = smov %s1321_s12 }
  0xff   :  { %11 = sbr.rel (!%p9_p5) target bundleno = 2 (0x2), region = 69 }

</bundles_post_ra>
